<compile_context>
chip_gen: v7x
topology: tpu7x:2x2x1
jax: 0.10.0
libtpu: 0.0.40
codegen_flags: <defaults>
</compile_context>

<pallas_src>
import functools

import jax
import jax.numpy as jnp
from jax.experimental import pallas as pl
from jax.experimental.pallas import tpu as pltpu


def _cheby_pool_kernel(x_ref, pool_ref, sel_ref, o_ref, *, k):
    # x_ref:    (tile_r, k, Wk)  tile_r output rows x k window rows x Wo*k cols
    # pool_ref: (Wk, Wo)         0/1 matrix: column j sums lanes [j*k, (j+1)*k)
    # sel_ref:  (k, Wk, Wo)      one-hot matrices: sel[d] picks lane j*k + d
    # o_ref:    (tile_r, Wo)
    inv = 1.0 / float(k * k)

    # H-direction (sublane) window reduction via static row slices of the ref.
    x0 = x_ref[:, 0, :].astype(jnp.float32)          # (tile_r, Wk)
    s = x0
    s2 = x0 * x0
    mx = x0
    for d in range(1, k):
        xd = x_ref[:, d, :].astype(jnp.float32)
        s = s + xd
        s2 = s2 + xd * xd
        mx = jnp.maximum(mx, xd)

    pool = pool_ref[...]

    # W-direction (lane-group) reduction on the MXU (exact: 0/1 matrices).
    sum_w = jnp.dot(s, pool, preferred_element_type=jnp.float32)    # (tile_r, Wo)
    sum2_w = jnp.dot(s2, pool, preferred_element_type=jnp.float32)  # (tile_r, Wo)

    max_w = jnp.dot(mx, sel_ref[0], preferred_element_type=jnp.float32)
    for d in range(1, k):
        max_w = jnp.maximum(
            max_w, jnp.dot(mx, sel_ref[d], preferred_element_type=jnp.float32))

    mean = sum_w * inv                                # AvgPool2d(x)
    var = sum2_w * inv - mean * mean                  # AvgPool2d(x^2) - mean^2

    # softplus(MaxPool2d(x)), numerically stable (torch beta=1, threshold=20)
    t = jnp.where(max_w > 20.0,
                  max_w,
                  jnp.log1p(jnp.exp(jnp.minimum(max_w, 20.0))))

    denom = var + (t - mean) ** 2
    r = var * pl.reciprocal(denom, approx=False)

    # torch.nan_to_num defaults: nan -> 0, +/-inf -> finfo max/min
    finfo = jnp.finfo(jnp.float32)
    r = jnp.where(jnp.isnan(r), jnp.float32(0.0), r)
    r = jnp.clip(r, finfo.min, finfo.max)

    o_ref[...] = r.astype(o_ref.dtype)


def cheby_pooling2d(x, kernel_size):
    N, C, H, W = x.shape
    k = int(kernel_size)
    Ho, Wo = H // k, W // k
    Wk = Wo * k
    R = N * C * Ho

    # Transpose-free layout: pure reshape of the (cropped) NCHW input.  Each grid
    # step DMAs a contiguous slab of `tile_r` window-rows.
    xr = x[:, :, : Ho * k, :Wk].reshape(R, k, Wk)

    # Constant lane-group reduction matrices.  Their block index never changes,
    # so Pallas copies them into VMEM once and reuses them across the grid.
    lane = jnp.arange(Wk)
    outc = jnp.arange(Wo)
    pool_mat = (lane[:, None] // k == outc[None, :]).astype(jnp.float32)   # (Wk, Wo)
    sel_mat = (lane[None, :, None]
               == (outc[None, None, :] * k + jnp.arange(k)[:, None, None])
               ).astype(jnp.float32)                                       # (k, Wk, Wo)

    # Tile sizing: per input buffer the (k, Wk) trailing tile pads k -> 8
    # sublanes and Wk -> multiple of 128 lanes in VMEM.  Target <= ~6 MiB per
    # buffer (x2 for double buffering) so the whole call stays well under a
    # 32 MiB scoped VMEM limit (portable to v7x's 64 MiB physical VMEM) while
    # still moving MiB-scale slabs per grid step.
    wk_pad = max(128, ((Wk + 127) // 128) * 128)
    tile_r = (6 * 1024 * 1024) // (8 * wk_pad * 4)
    tile_r = max(8, (tile_r // 8) * 8)
    tile_r = min(tile_r, max(R, 1))
    grid = (pl.cdiv(R, tile_r),)   # partial last block handled by Pallas; no jnp.pad

    # Advisory cost: mem-bound pooling + small one-hot MXU matmuls.
    cost = pl.CostEstimate(
        flops=(2 + k) * 2 * R * Wk * Wo + 12 * R * k * Wk,
        transcendentals=3 * R * Wo,
        bytes_accessed=4 * (R * k * Wk + R * Wo + (k + 1) * Wk * Wo),
    )

    out = pl.pallas_call(
        functools.partial(_cheby_pool_kernel, k=k),
        out_shape=jax.ShapeDtypeStruct((R, Wo), x.dtype),
        grid_spec=pltpu.PrefetchScalarGridSpec(
            num_scalar_prefetch=0,
            grid=grid,
            in_specs=[
                pl.BlockSpec((tile_r, k, Wk), lambda i: (i, 0, 0)),
                pl.BlockSpec((Wk, Wo), lambda i: (0, 0)),
                pl.BlockSpec((k, Wk, Wo), lambda i: (0, 0, 0)),
            ],
            out_specs=pl.BlockSpec((tile_r, Wo), lambda i: (i, 0)),
        ),
        compiler_params=pltpu.CompilerParams(
            dimension_semantics=("parallel",),
            vmem_limit_bytes=32 * 1024 * 1024,
        ),
        cost_estimate=cost,
    )(xr, pool_mat, sel_mat)

    return out.reshape(N, C, Ho, Wo)


def _reference(x, k):
    # Pure-JAX reference of the PyTorch forward (for correctness check only).
    N, C, H, W = x.shape
    Ho, Wo = H // k, W // k
    xw = x[:, :, : Ho * k, : Wo * k].reshape(N, C, Ho, k, Wo, k)
    mean = xw.mean(axis=(3, 5))
    var = (xw ** 2).mean(axis=(3, 5)) - mean ** 2
    t = jax.nn.softplus(xw.max(axis=(3, 5)))
    r = var / (var + (t - mean) ** 2)
    return jnp.nan_to_num(r)


if __name__ == "__main__":
    key = jax.random.PRNGKey(0)
    N, C, H, W = 2, 4, 16, 16
    kernel_size = 2
    x = jax.random.normal(key, (N, C, H, W), dtype=jnp.float32)

    out = jax.block_until_ready(cheby_pooling2d(x, kernel_size))

    ref = _reference(x, kernel_size)
    assert out.shape == (N, C, H // kernel_size, W // kernel_size)
    assert jnp.allclose(out, ref, atol=1e-5, rtol=1e-5), "mismatch vs reference"

    print("KERNEL_OK")
</pallas_src>

<mosaic_0001>
module attributes {stable_mosaic.version = 11 : i64} {
  func.func @_cheby_pool_kernel(%arg0: i32, %arg1: memref<64x2x16xf32, #tpu.memory_space<vmem>>, %arg2: memref<16x8xf32, #tpu.memory_space<vmem>>, %arg3: memref<2x16x8xf32, #tpu.memory_space<vmem>>, %arg4: memref<64x8xf32, #tpu.memory_space<vmem>>) attributes {dimension_semantics = [#tpu.dimension_semantics<parallel>], iteration_bounds = array<i64: 1>, scalar_prefetch = 0 : i64, scratch_operands = 0 : i64, tpu.core_type = #tpu.core_type<tc>, window_params = [{transform_indices = @transform_0, window_bounds = array<i64: 64, 2, 16>}, {pipeline_mode = #tpu.pipeline_mode<synchronous>, transform_indices = @transform_1, window_bounds = array<i64: 16, 8>}, {pipeline_mode = #tpu.pipeline_mode<synchronous>, transform_indices = @transform_2, window_bounds = array<i64: 2, 16, 8>}, {transform_indices = @transform_3, window_bounds = array<i64: 64, 8>}]} {
    %c0 = arith.constant 0 : index
    %c0_0 = arith.constant 0 : index
    %c0_1 = arith.constant 0 : index
    %0 = vector.load %arg1[%c0, %c0_0, %c0_1] : memref<64x2x16xf32, #tpu.memory_space<vmem>>, vector<64x1x16xf32>
    %1 = vector.shape_cast %0 : vector<64x1x16xf32> to vector<64x16xf32>
    %2 = arith.mulf %1, %1 : vector<64x16xf32>
    %c0_2 = arith.constant 0 : index
    %c1 = arith.constant 1 : index
    %c0_3 = arith.constant 0 : index
    %3 = vector.load %arg1[%c0_2, %c1, %c0_3] : memref<64x2x16xf32, #tpu.memory_space<vmem>>, vector<64x1x16xf32>
    %4 = vector.shape_cast %3 : vector<64x1x16xf32> to vector<64x16xf32>
    %5 = arith.addf %1, %4 : vector<64x16xf32>
    %6 = arith.mulf %4, %4 : vector<64x16xf32>
    %7 = arith.addf %2, %6 : vector<64x16xf32>
    %8 = arith.maximumf %1, %4 : vector<64x16xf32>
    %c0_4 = arith.constant 0 : index
    %c0_5 = arith.constant 0 : index
    %9 = vector.load %arg2[%c0_4, %c0_5] : memref<16x8xf32, #tpu.memory_space<vmem>>, vector<16x8xf32>
    %cst = arith.constant dense<0.000000e+00> : vector<64x8xf32>
    %10 = tpu.matmul %5, %9, %cst {dimension_numbers = #tpu.dot_dimension_numbers<[1], [0], [0], [1], [0, 0, 1, 1], [], []>} : vector<64x16xf32>, vector<16x8xf32>, vector<64x8xf32> -> vector<64x8xf32>
    %cst_6 = arith.constant dense<0.000000e+00> : vector<64x8xf32>
    %11 = tpu.matmul %7, %9, %cst_6 {dimension_numbers = #tpu.dot_dimension_numbers<[1], [0], [0], [1], [0, 0, 1, 1], [], []>} : vector<64x16xf32>, vector<16x8xf32>, vector<64x8xf32> -> vector<64x8xf32>
    %c0_7 = arith.constant 0 : index
    %c0_8 = arith.constant 0 : index
    %c0_9 = arith.constant 0 : index
    %12 = vector.load %arg3[%c0_7, %c0_8, %c0_9] : memref<2x16x8xf32, #tpu.memory_space<vmem>>, vector<1x16x8xf32>
    %13 = vector.shape_cast %12 : vector<1x16x8xf32> to vector<16x8xf32>
    %cst_10 = arith.constant dense<0.000000e+00> : vector<64x8xf32>
    %14 = tpu.matmul %8, %13, %cst_10 {dimension_numbers = #tpu.dot_dimension_numbers<[1], [0], [0], [1], [0, 0, 1, 1], [], []>} : vector<64x16xf32>, vector<16x8xf32>, vector<64x8xf32> -> vector<64x8xf32>
    %c1_11 = arith.constant 1 : index
    %c0_12 = arith.constant 0 : index
    %c0_13 = arith.constant 0 : index
    %15 = vector.load %arg3[%c1_11, %c0_12, %c0_13] : memref<2x16x8xf32, #tpu.memory_space<vmem>>, vector<1x16x8xf32>
    %16 = vector.shape_cast %15 : vector<1x16x8xf32> to vector<16x8xf32>
    %cst_14 = arith.constant dense<0.000000e+00> : vector<64x8xf32>
    %17 = tpu.matmul %8, %16, %cst_14 {dimension_numbers = #tpu.dot_dimension_numbers<[1], [0], [0], [1], [0, 0, 1, 1], [], []>} : vector<64x16xf32>, vector<16x8xf32>, vector<64x8xf32> -> vector<64x8xf32>
    %18 = arith.maximumf %14, %17 : vector<64x8xf32>
    %cst_15 = arith.constant 2.500000e-01 : f32
    %19 = vector.broadcast %cst_15 : f32 to vector<64x8xf32>
    %20 = arith.mulf %10, %19 : vector<64x8xf32>
    %cst_16 = arith.constant 2.500000e-01 : f32
    %21 = vector.broadcast %cst_16 : f32 to vector<64x8xf32>
    %22 = arith.mulf %11, %21 : vector<64x8xf32>
    %23 = arith.mulf %20, %20 : vector<64x8xf32>
    %24 = arith.subf %22, %23 : vector<64x8xf32>
    %cst_17 = arith.constant 2.000000e+01 : f32
    %25 = vector.broadcast %cst_17 : f32 to vector<64x8xf32>
    %26 = arith.cmpf ogt, %18, %25 : vector<64x8xf32>
    %cst_18 = arith.constant 2.000000e+01 : f32
    %27 = vector.broadcast %cst_18 : f32 to vector<64x8xf32>
    %28 = arith.minimumf %18, %27 : vector<64x8xf32>
    %29 = math.exp %28 : vector<64x8xf32>
    %30 = math.log1p %29 : vector<64x8xf32>
    %31 = arith.select %26, %18, %30 : vector<64x8xi1>, vector<64x8xf32>
    %32 = arith.subf %31, %20 : vector<64x8xf32>
    %33 = arith.mulf %32, %32 : vector<64x8xf32>
    %34 = arith.addf %24, %33 : vector<64x8xf32>
    %35 = tpu.reciprocal %34 : vector<64x8xf32> -> vector<64x8xf32>
    %36 = arith.mulf %24, %35 : vector<64x8xf32>
    %37 = arith.cmpf one, %36, %36 : vector<64x8xf32>
    %cst_19 = arith.constant 0.000000e+00 : f32
    %38 = vector.broadcast %cst_19 : f32 to vector<64x8xf32>
    %39 = arith.select %37, %38, %36 : vector<64x8xi1>, vector<64x8xf32>
    %cst_20 = arith.constant -3.40282347E+38 : f32
    %cst_21 = arith.constant 3.40282347E+38 : f32
    %40 = vector.broadcast %cst_20 : f32 to vector<64x8xf32>
    %41 = arith.maximumf %40, %39 : vector<64x8xf32>
    %42 = vector.broadcast %cst_21 : f32 to vector<64x8xf32>
    %43 = arith.minimumf %42, %41 : vector<64x8xf32>
    %c0_22 = arith.constant 0 : index
    %c0_23 = arith.constant 0 : index
    %44 = vector.load %arg4[%c0_22, %c0_23] : memref<64x8xf32, #tpu.memory_space<vmem>>, vector<64x8xf32>
    tpu.vector_store %arg4[%c0_22, %c0_23], %43 {strides = array<i32>} : memref<64x8xf32, #tpu.memory_space<vmem>>, vector<64x8xf32>,
    return
  }
  func.func @transform_0(%arg0: i32) -> (i32, i32, i32) {
    %c0_i32 = arith.constant 0 : i32
    %c0_i32_0 = arith.constant 0 : i32
    %c0_i32_1 = arith.constant 0 : i32
    return %arg0, %c0_i32, %c0_i32_0 : i32, i32, i32
  }
  func.func @transform_1(%arg0: i32) -> (i32, i32) {
    %c0_i32 = arith.constant 0 : i32
    %c0_i32_0 = arith.constant 0 : i32
    %c0_i32_1 = arith.constant 0 : i32
    return %c0_i32, %c0_i32_0 : i32, i32
  }
  func.func @transform_2(%arg0: i32) -> (i32, i32, i32) {
    %c0_i32 = arith.constant 0 : i32
    %c0_i32_0 = arith.constant 0 : i32
    %c0_i32_1 = arith.constant 0 : i32
    %c0_i32_2 = arith.constant 0 : i32
    return %c0_i32, %c0_i32_0, %c0_i32_1 : i32, i32, i32
  }
  func.func @transform_3(%arg0: i32) -> (i32, i32) {
    %c0_i32 = arith.constant 0 : i32
    %c0_i32_0 = arith.constant 0 : i32
    return %arg0, %c0_i32 : i32, i32
  }
}

</mosaic_0001>

<bundles_post_ra>
// kernel: tpu_custom_call.1
= control target key start
LH: loop header
LB: loop body
LE: loop exit
PB: predicated region body
PF: predicated region fallthrough
CT: control target
= control target key end

     0   :  { %vm529_vm0 = vcmask 1041409   ;;  %vm532_vm1 = vcmask 1042434   ;;  %vm535_vm2 = vcmask 1043459   ;;  %vm538_vm3 = vcmask 1044484   ;;  %s3532_s1 = inlined_call_operand.vmem [shape: f32[16,8], index: 1, kind: input, shape index: {}]   ;;  %s3533_s0 = inlined_call_operand.vmem [shape: f32[64,2,16], index: 0, kind: input, shape index: {}]   ;;  %s3534_s2 = inlined_call_operand.vmem [shape: f32[2,16,8], index: 2, kind: input, shape index: {}]   ;;  %s3535_s3 = inlined_call_operand.vmem [shape: f32[64,8], index: 3, kind: output, shape index: {}]  }
   0x1   :  { %v462_v0 = vld [vmem:[%s3532_s1] sm:$0xff]  ;;  %v463_v1 = vld [vmem:[%s3532_s1 + $0x8] sm:$0xff]  ;;  %vm541_vm4 = vcmask 1045509   ;;  %vm544_vm5 = vcmask 1046534   ;;  %v2047_v37 = vld [vmem:[%s3533_s0 + $0x10] sm:$0x1] }
   0x2   :  { %v14_v2 = vld [vmem:[%s3533_s0] sm:$0x1]  ;;  %v1856_v3 = vpack.c.bf16 %v463_v1, %v462_v0  ;;  %v15_v4 = vld [vmem:[%s3533_s0 + $0x2] sm:$0x1]  ;;  %v16_v5 = vld [vmem:[%s3533_s0 + $0x4] sm:$0x1] }
   0x3   :  { %v17_v6 = vld [vmem:[%s3533_s0 + $0x6] sm:$0x1]  ;;  %v18_v7 = vld [vmem:[%s3533_s0 + $0x8] sm:$0x1]  ;;  %v19_v8 = vld [vmem:[%s3533_s0 + $0xa] sm:$0x1]  ;;  %v1996_v10 = vmul.f32 %v14_v2, %v14_v2  ;;  %v1998_v11 = vmul.f32 %v15_v4, %v15_v4  ;;  %v2000_v12 = vmul.f32 %v16_v5, %v16_v5 }
   0x4   :  { %v20_v9 = vld [vmem:[%s3533_s0 + $0xc] sm:$0x1]  ;;  %v2002_v13 = vmul.f32 %v17_v6, %v17_v6  ;;  %1857 = vmatprep.subr.bf16.mxu0 %v1856_v3  ;;  %1861 = vmatprep.subr.bf16.mxu1 %v1856_v3  ;;  %v21_v14 = vld [vmem:[%s3533_s0 + $0xe] sm:$0x1]  ;;  %v142_v15 = vld [vmem:[%s3533_s0 + $0x1] sm:$0x1]  ;;  %v2013_v17 = vmul.f32 %v18_v7, %v18_v7  ;;  %v2015_v18 = vmul.f32 %v19_v8, %v19_v8 }
   0x5   :  { %v143_v16 = vld [vmem:[%s3533_s0 + $0x3] sm:$0x1]  ;;  %v2017_v19 = vmul.f32 %v20_v9, %v20_v9  ;;  %1859 = vmatpush3.bf16.msra.mxu0 %v1856_v3  ;;  %1863 = vmatpush3.bf16.msra.mxu1 %v1856_v3  ;;  %v144_v20 = vld [vmem:[%s3533_s0 + $0x5] sm:$0x1]  ;;  %v145_v21 = vld [vmem:[%s3533_s0 + $0x7] sm:$0x1]  ;;  %v206_v23 = vadd.f32 %v142_v15, %v14_v2  ;;  %v2028_v25 = vmul.f32 %v21_v14, %v21_v14 }
   0x6   :  { %v146_v22 = vld [vmem:[%s3533_s0 + $0x9] sm:$0x1]  ;;  %v207_v24 = vadd.f32 %v143_v16, %v15_v4  ;;  %v147_v26 = vld [vmem:[%s3533_s0 + $0xb] sm:$0x1]  ;;  %v148_v27 = vld [vmem:[%s3533_s0 + $0xd] sm:$0x1]  ;;  %v208_v29 = vadd.f32 %v144_v20, %v16_v5  ;;  %v209_v30 = vadd.f32 %v145_v21, %v17_v6  ;;  %v2041_v32 = vmul.f32 %v142_v15, %v142_v15 }
   0x7   :  { %v2039_v28 = vld [vmem:[%s3533_s0 + $0xf] sm:$0x1]  ;;  %v210_v31 = vadd.f32 %v146_v22, %v18_v7  ;;  %v211_v33 = vadd.f32 %v147_v26, %v19_v8  ;;  %v212_v34 = vadd.f32 %v148_v27, %v20_v9  ;;  %vm547_vm6 = vcmask 1047559   ;;  %v2052_v41 = vld [vmem:[%s3533_s0 + $0x12] sm:$0x1] }
   0x8   :  { %v213_v35 = vadd.f32 %v2039_v28, %v21_v14  ;;  %v528_v36 = vrot.slane %v207_v24, 7  ;;  %v531_v38 = vrot.slane %v208_v29, 6  ;;  %v534_v39 = vrot.slane %v209_v30, 5  ;;  %v2057_v42 = vld [vmem:[%s3533_s0 + $0x14] sm:$0x1] }
   0x9   :  { %v537_v40 = vrot.slane %v210_v31, 4  ;;  %v540_v44 = vrot.slane %v211_v33, 3  ;;  %v543_v45 = vrot.slane %v212_v34, 2  ;;  %v2063_v47 = vld [vmem:[%s3533_s0 + $0x16] sm:$0x1]  ;;  %vm647_vm7 = vcmask 130048  }
   0xa   :  { %v530_v43 = vsel %vm529_vm0, %v528_v36, %v206_v23  ;;  %v546_v46 = vrot.slane %v213_v35, 1  ;;  %v2069_v49 = vld [vmem:[%s3533_s0 + $0x18] sm:$0x1]  ;;  %v2074_v50 = vld [vmem:[%s3533_s0 + $0x1a] sm:$0x1]  ;;  %v271_v51 = vmul.f32 %v143_v16, %v143_v16  ;;  %v272_v52 = vmul.f32 %v144_v20, %v144_v20 }
   0xb   :  { %v533_v48 = vsel %vm532_vm1, %v531_v38, %v530_v43  ;;  %3606 = vst [vmem:[#allocation2_spill] sm:$0xff] %v2074_v50  ;;  %v2080_v54 = vld [vmem:[%s3533_s0 + $0x1c] sm:$0x1]  ;;  %v2085_v55 = vld [vmem:[%s3533_s0 + $0x1e] sm:$0x1]  ;;  %v273_v57 = vmul.f32 %v145_v21, %v145_v21  ;;  %v274_v58 = vmul.f32 %v146_v22, %v146_v22  ;;  %v275_v59 = vmul.f32 %v147_v26, %v147_v26 }
   0xc   :  { %v536_v53 = vsel %vm535_vm2, %v534_v39, %v533_v48  ;;  %3607 = vst [vmem:[#allocation3_spill] sm:$0xff] %v2080_v54  ;;  %3608 = vst [vmem:[#allocation4_spill] sm:$0xff] %v2085_v55  ;;  %v2090_v56 = vld [vmem:[%s3533_s0 + $0x11] sm:$0x1]  ;;  %v2096_v61 = vld [vmem:[%s3533_s0 + $0x13] sm:$0x1]  ;;  %v276_v2 = vmul.f32 %v148_v27, %v148_v27  ;;  %v335_v48 = vadd.f32 %v271_v51, %v1998_v11 }
   0xd   :  { %v539_v60 = vsel %vm538_vm3, %v537_v40, %v536_v53  ;;  %v2101_v62 = vld [vmem:[%s3533_s0 + $0x15] sm:$0x1]  ;;  %v2106_v63 = vld [vmem:[%s3533_s0 + $0x17] sm:$0x1]  ;;  %v214_v0 = vadd.f32 %v2090_v56, %v2047_v37  ;;  %v2116_v4 = vld [vmem:[%s3533_s0 + $0x19] sm:$0x1]  ;;  %v215_v7 = vadd.f32 %v2096_v61, %v2052_v41 }
   0xe   :  { %v542_v3 = vsel %vm541_vm4, %v540_v44, %v539_v60  ;;  %3609 = vst [vmem:[#allocation5_spill] sm:$0xff] %v2116_v4  ;;  %v2121_v5 = vld [vmem:[%s3533_s0 + $0x1b] sm:$0x1]  ;;  %v2126_v6 = vld [vmem:[%s3533_s0 + $0x1d] sm:$0x1]  ;;  %v216_v8 = vadd.f32 %v2101_v62, %v2057_v42  ;;  %v217_v9 = vadd.f32 %v2106_v63, %v2063_v47  ;;  %v218_v16 = vadd.f32 %v2116_v4, %v2069_v49  ;;  %v1067_v11 = vld [vmem:[%s3534_s2 + $0x8] sm:$0xff] }
   0xf   :  { %3610 = vst [vmem:[#allocation6_spill] sm:$0xff] %v2121_v5  ;;  %3611 = vst [vmem:[#allocation7_spill] sm:$0xff] %v2126_v6  ;;  %v545_v14 = vsel %vm544_vm5, %v543_v45, %v542_v3  ;;  %v2138_v15 = vld [vmem:[%s3533_s0 + $0x1f] sm:$0x1]  ;;  %v219_v20 = vadd.f32 %v2121_v5, %v2074_v50  ;;  %v220_v21 = vadd.f32 %v2126_v6, %v2080_v54  ;;  %v549_v34 = vrot.slane %v215_v7, 7 }
  0x10   :  { %3612 = vst [vmem:[#allocation8_spill] sm:$0xff] %v2138_v15  ;;  %v548_v22 = vsel %vm547_vm6, %v546_v46, %v545_v14  ;;  %v221_v23 = vadd.f32 %v2138_v15, %v2085_v55  ;;  %v551_v35 = vrot.slane %v216_v8, 6  ;;  %v553_v36 = vrot.slane %v217_v9, 5  ;;  %v2386_v29 = vld [vmem:[%s3533_s0 + $0x3c] sm:$0x1] }
  0x11   :  { %1796 = vmatprep.mubr.msk.f32.mxu0 %vm647_vm7, %v548_v22  ;;  %v555_v38 = vrot.slane %v218_v16, 4  ;;  %v557_v39 = vrot.slane %v219_v20, 3  ;;  %v559_v40 = vrot.slane %v220_v21, 2  ;;  %v550_v44 = vsel %vm529_vm0, %v549_v34, %v214_v0  ;;  %3625 = vst [vmem:[#allocation21_spill] sm:$0xff] %v2386_v29  ;;  %v2391_v1 = vld [vmem:[%s3533_s0 + $0x3e] sm:$0x1] }
  0x12   :  { %v561_v43 = vrot.slane %v221_v23, 1  ;;  %v277_v45 = vmul.f32 %v2039_v28, %v2039_v28  ;;  %v334_v46 = vadd.f32 %v2041_v32, %v1996_v10  ;;  %v552_v53 = vsel %vm532_vm1, %v551_v35, %v550_v44  ;;  %v1066_v10 = vld [vmem:[%s3534_s2] sm:$0xff]  ;;  %3626 = vst [vmem:[#allocation22_spill] sm:$0xff] %v2391_v1  ;;  %v2396_v27 = vld [vmem:[%s3533_s0 + $0x37] sm:$0x1] }
  0x13   :  { %v336_v60 = vadd.f32 %v272_v52, %v2000_v12  ;;  %v337_v3 = vadd.f32 %v273_v57, %v2002_v13  ;;  %v338_v7 = vadd.f32 %v274_v58, %v2013_v17  ;;  %v554_v8 = vsel %vm535_vm2, %v553_v36, %v552_v53  ;;  %3627 = vst [vmem:[#allocation23_spill] sm:$0xff] %v2396_v27  ;;  %v2408_v26 = vld [vmem:[%s3533_s0 + $0x3b] sm:$0x1] }
  0x14   :  { %v339_v0 = vadd.f32 %v275_v59, %v2015_v18  ;;  %v340_v9 = vadd.f32 %v276_v2, %v2017_v19  ;;  %v341_v28 = vadd.f32 %v277_v45, %v2028_v25  ;;  %v556_v12 = vsel %vm538_vm3, %v555_v38, %v554_v8  ;;  %v1734_v18 = vld [vmem:[%s3534_s2 + $0x10] sm:$0xff]  ;;  %v1735_v19 = vld [vmem:[%s3534_s2 + $0x18] sm:$0xff]  ;;  %3629 = vst [vmem:[#allocation25_spill] sm:$0xff] %v2408_v26 }
  0x15   :  { %v833_v13 = vrot.slane %v335_v48, 7  ;;  %v835_v17 = vrot.slane %v336_v60, 6  ;;  %v837_v32 = vrot.slane %v337_v3, 5  ;;  %v558_v25 = vsel %vm541_vm4, %v557_v39, %v556_v12  ;;  %v2253_v12 = vld [vmem:[%s3533_s0 + $0x21] sm:$0x1] }
  0x16   :  { %v839_v51 = vrot.slane %v338_v7, 4  ;;  %v841_v52 = vrot.slane %v339_v0, 3  ;;  %v560_v57 = vsel %vm544_vm5, %v559_v40, %v558_v25  ;;  %v843_v59 = vrot.slane %v340_v9, 2  ;;  %v2231_v7 = vld [vmem:[%s3533_s0 + $0x20] sm:$0x1] }
  0x17   :  { %v834_v58 = vsel %vm529_vm0, %v833_v13, %v334_v46  ;;  %v1864_v2 = vpack.c.bf16 %v1067_v11, %v1066_v10  ;;  %v562_v14 = vsel %vm547_vm6, %v561_v43, %v560_v57  ;;  %v2196_v20 = vpack.c.bf16 %v1735_v19, %v1734_v18  ;;  %v2243_v10 = vld [vmem:[%s3533_s0 + $0x22] sm:$0x1]  ;;  %v2248_v11 = vld [vmem:[%s3533_s0 + $0x24] sm:$0x1]  ;;  %v2261_v19 = vld [vmem:[%s3533_s0 + $0x26] sm:$0x1] }
  0x18   :  { %v836_v16 = vsel %vm532_vm1, %v835_v17, %v834_v58  ;;  %v86_v21 = vmul.f32 %v2047_v37, %v2047_v37  ;;  %1797 = vmatmul.mubr.msk.f32.vlgmr.msra.gmra.mrb[0].mxu0 %vm647_vm7, %v562_v14  ;;  %v845_v23 = vrot.slane %v341_v28, 1  ;;  %v87_v34 = vmul.f32 %v2052_v41, %v2052_v41  ;;  %v2266_v25 = vld [vmem:[%s3533_s0 + $0x28] sm:$0x1]  ;;  %v2281_v14 = vld [vmem:[%s3533_s0 + $0x2c] sm:$0x1] }
  0x19   :  { %v838_v22 = vsel %vm535_vm2, %v837_v32, %v836_v16  ;;  %1865 = vmatprep.subr.bf16.mxu0 %v1864_v2  ;;  %v88_v35 = vmul.f32 %v2057_v42, %v2057_v42  ;;  %1869 = vmatprep.subr.bf16.mxu1 %v2196_v20  ;;  %v89_v38 = vmul.f32 %v2063_v47, %v2063_v47  ;;  %v2286_v16 = vld [vmem:[%s3533_s0 + $0x2e] sm:$0x1] }
  0x1a   :  { %v840_v36 = vsel %vm538_vm3, %v839_v51, %v838_v22  ;;  %v90_v39 = vmul.f32 %v2069_v49, %v2069_v49  ;;  %v91_v40 = vmul.f32 %v2074_v50, %v2074_v50  ;;  %v92_v44 = vmul.f32 %v2080_v54, %v2080_v54  ;;  %1867 = vmatpush3.bf16.msra.mxu0 %v1864_v2  ;;  %v2271_v51 = vld [vmem:[%s3533_s0 + $0x2a] sm:$0x1]  ;;  %v2296_v22 = vld [vmem:[%s3533_s0 + $0x27] sm:$0x1] }
  0x1b   :  { %v842_v43 = vsel %vm541_vm4, %v841_v52, %v840_v36  ;;  %v93_v45 = vmul.f32 %v2085_v55, %v2085_v55  ;;  %v278_v46 = vmul.f32 %v2090_v56, %v2090_v56  ;;  %v279_v53 = vmul.f32 %v2096_v61, %v2096_v61  ;;  %v2276_v52 = vld [vmem:[%s3533_s0 + $0x23] sm:$0x1]  ;;  %3614 = vst [vmem:[#allocation10_spill] sm:$0xff] %v2296_v22 }
  0x1c   :  { %v844_v48 = vsel %vm544_vm5, %v843_v59, %v842_v43  ;;  %v280_v60 = vmul.f32 %v2101_v62, %v2101_v62  ;;  %v281_v3 = vmul.f32 %v2106_v63, %v2106_v63  ;;  %v282_v0 = vmul.f32 %v2116_v4, %v2116_v4 }
  0x1d   :  { %v846_v8 = vsel %vm547_vm6, %v845_v23, %v844_v48  ;;  %v283_v9 = vmul.f32 %v2121_v5, %v2121_v5  ;;  %v284_v28 = vmul.f32 %v2126_v6, %v2126_v6  ;;  %v285_v13 = vmul.f32 %v2138_v15, %v2138_v15  ;;  %v2301_v23 = vld [vmem:[%s3533_s0 + $0x29] sm:$0x1] }
  0x1e   :  { %1812 = vmatprep.mubr.msk.f32.mxu1 %vm647_vm7, %v846_v8  ;;  %v342_v17 = vadd.f32 %v278_v46, %v86_v21  ;;  %v343_v32 = vadd.f32 %v279_v53, %v87_v34  ;;  %v344_v18 = vadd.f32 %v280_v60, %v88_v35  ;;  %v345_v57 = vadd.f32 %v281_v3, %v89_v38  ;;  %v2291_v21 = vld [vmem:[%s3533_s0 + $0x25] sm:$0x1]  ;;  %v2306_v38 = vld [vmem:[%s3533_s0 + $0x2b] sm:$0x1] }
  0x1f   :  { %v346_v58 = vadd.f32 %v282_v0, %v90_v39  ;;  %v347_v59 = vadd.f32 %v283_v9, %v91_v40  ;;  %v348_v2 = vadd.f32 %v284_v28, %v92_v44  ;;  %3613 = vst [vmem:[#allocation9_spill] sm:$0xff] %v2291_v21  ;;  %v349_v34 = vadd.f32 %v285_v13, %v93_v45  ;;  %v2311_v39 = vld [vmem:[%s3533_s0 + $0x2d] sm:$0x1]  ;;  %v2318_v45 = vld [vmem:[%s3533_s0 + $0x2f] sm:$0x1] }
  0x20   :  { %v847_v35 = vrot.slane %v343_v32, 7  ;;  %v849_v36 = vrot.slane %v344_v18, 6  ;;  %3615 = vst [vmem:[#allocation11_spill] sm:$0xff] %v2306_v38  ;;  %v222_v40 = vadd.f32 %v2253_v12, %v2231_v7  ;;  %v851_v43 = vrot.slane %v345_v57, 5  ;;  %3616 = vst [vmem:[#allocation12_spill] sm:$0xff] %v2318_v45 }
  0x21   :  { %v853_v44 = vrot.slane %v346_v58, 4  ;;  %v855_v46 = vrot.slane %v347_v59, 3  ;;  %v857_v48 = vrot.slane %v348_v2, 2  ;;  %v859_v60 = vrot.slane %v349_v34, 1  ;;  %v2328_v0 = vld [vmem:[%s3533_s0 + $0x30] sm:$0x1] }
  0x22   :  { %v848_v53 = vsel %vm529_vm0, %v847_v35, %v342_v17  ;;  %v223_v3 = vadd.f32 %v2276_v52, %v2243_v10  ;;  %v224_v8 = vadd.f32 %v2291_v21, %v2248_v11  ;;  %v225_v28 = vadd.f32 %v2296_v22, %v2261_v19  ;;  %v2340_v32 = vld [vmem:[%s3533_s0 + $0x32] sm:$0x1]  ;;  %v2345_v18 = vld [vmem:[%s3533_s0 + $0x34] sm:$0x1]  ;;  %v2350_v57 = vld [vmem:[%s3533_s0 + $0x31] sm:$0x1] }
  0x23   :  { %v850_v9 = vsel %vm532_vm1, %v849_v36, %v848_v53  ;;  %v226_v13 = vadd.f32 %v2301_v23, %v2266_v25  ;;  %v227_v17 = vadd.f32 %v2306_v38, %v2271_v51  ;;  %3617 = vst [vmem:[#allocation13_spill] sm:$0xff] %v2340_v32  ;;  %3618 = vst [vmem:[#allocation14_spill] sm:$0xff] %v2345_v18  ;;  %v2360_v35 = vld [vmem:[%s3533_s0 + $0x36] sm:$0x1]  ;;  %v2365_v36 = vld [vmem:[%s3533_s0 + $0x38] sm:$0x1] }
  0x24   :  { %3619 = vst [vmem:[#allocation15_spill] sm:$0xff] %v2350_v57  ;;  %v852_v58 = vsel %vm535_vm2, %v851_v43, %v850_v9  ;;  %v228_v59 = vadd.f32 %v2311_v39, %v2281_v14  ;;  %v229_v2 = vadd.f32 %v2318_v45, %v2286_v16  ;;  %v563_v34 = vrot.slane %v223_v3, 7  ;;  %3620 = vst [vmem:[#allocation16_spill] sm:$0xff] %v2360_v35  ;;  %v2370_v43 = vld [vmem:[%s3533_s0 + $0x3a] sm:$0x1] }
  0x25   :  { %3621 = vst [vmem:[#allocation17_spill] sm:$0xff] %v2365_v36  ;;  %3622 = vst [vmem:[#allocation18_spill] sm:$0xff] %v2370_v43  ;;  %v2375_v53 = vld [vmem:[%s3533_s0 + $0x33] sm:$0x1]  ;;  %v2380_v3 = vld [vmem:[%s3533_s0 + $0x35] sm:$0x1]  ;;  %v854_v9 = vsel %vm538_vm3, %v853_v44, %v852_v58  ;;  %v94_v4 = vmul.f32 %v2231_v7, %v2231_v7  ;;  %v100_v7 = vmul.f32 %v2281_v14, %v2281_v14 }
  0x26   :  { %3623 = vst [vmem:[#allocation19_spill] sm:$0xff] %v2375_v53  ;;  %3624 = vst [vmem:[#allocation20_spill] sm:$0xff] %v2380_v3  ;;  %v565_v33 = vrot.slane %v224_v8, 6  ;;  %v567_v31 = vrot.slane %v225_v28, 5  ;;  %v569_v30 = vrot.slane %v226_v13, 4  ;;  %v856_v44 = vsel %vm541_vm4, %v855_v46, %v854_v9 }
  0x27   :  { %v564_v8 = vsel %vm529_vm0, %v563_v34, %v222_v40  ;;  %v571_v28 = vrot.slane %v227_v17, 3  ;;  %v573_v13 = vrot.slane %v228_v59, 2  ;;  %v2403_v58 = vld [vmem:[%s3533_s0 + $0x39] sm:$0x1]  ;;  %v858_v24 = vsel %vm544_vm5, %v857_v48, %v856_v44  ;;  %v2415_v40 = vld [vmem:[%s3533_s0 + $0x3d] sm:$0x1] }
  0x28   :  { %3628 = vst [vmem:[#allocation24_spill] sm:$0xff] %v2403_v58  ;;  %v566_v15 = vsel %vm532_vm1, %v565_v33, %v564_v8  ;;  %v575_v55 = vrot.slane %v229_v2, 1  ;;  %3630 = vst [vmem:[#allocation26_spill] sm:$0xff] %v2415_v40  ;;  %v2420_v46 = vld [vmem:[%s3533_s0 + $0x3f] sm:$0x1]  ;;  %v230_v17 = vadd.f32 %v2350_v57, %v2328_v0  ;;  %v860_v59 = vsel %vm547_vm6, %v859_v60, %v858_v24 }
  0x29   :  { %3631 = vst [vmem:[#allocation27_spill] sm:$0xff] %v2420_v46  ;;  %v568_v48 = vsel %vm535_vm2, %v567_v31, %v566_v15  ;;  %v231_v33 = vadd.f32 %v2375_v53, %v2340_v32  ;;  %v232_v2 = vadd.f32 %v2380_v3, %v2345_v18  ;;  %1813 = vmatmul.mubr.msk.f32.vlgmr.msra.gmra.mrb[0].mxu1 %vm647_vm7, %v860_v59 }
  0x2a   :  { %v570_v34 = vsel %vm538_vm3, %v569_v30, %v568_v48  ;;  %v233_v9 = vadd.f32 %v2396_v27, %v2360_v35  ;;  %v234_v44 = vadd.f32 %v2403_v58, %v2365_v36  ;;  %v235_v24 = vadd.f32 %v2408_v26, %v2370_v43  ;;  %1871 = vmatpush3.bf16.msra.mxu1 %v2196_v20 }
  0x2b   :  { %v572_v15 = vsel %vm541_vm4, %v571_v28, %v570_v34  ;;  %v236_v31 = vadd.f32 %v2415_v40, %v2386_v29  ;;  %v237_v60 = vadd.f32 %v2420_v46, %v2391_v1  ;;  %v577_v30 = vrot.slane %v231_v33, 7 }
  0x2c   :  { %v574_v8 = vsel %vm544_vm5, %v573_v13, %v572_v15  ;;  %v579_v59 = vrot.slane %v232_v2, 6  ;;  %v581_v48 = vrot.slane %v233_v9, 5  ;;  %v583_v6 = vrot.slane %v234_v44, 4 }
  0x2d   :  { %v576_v54 = vsel %vm547_vm6, %v575_v55, %v574_v8  ;;  %v578_v5 = vsel %vm529_vm0, %v577_v30, %v230_v17  ;;  %v585_v50 = vrot.slane %v235_v24, 3  ;;  %v587_v20 = vrot.slane %v236_v31, 2 }
  0x2e   :  { %1799 = vmatprep.mubr.msk.f32.mxu0 %vm647_vm7, %v576_v54  ;;  %v580_v28 = vsel %vm532_vm1, %v579_v59, %v578_v5  ;;  %v589_v34 = vrot.slane %v237_v60, 1  ;;  %v95_v13 = vmul.f32 %v2243_v10, %v2243_v10  ;;  %v96_v55 = vmul.f32 %v2248_v11, %v2248_v11 }
  0x2f   :  { %v582_v33 = vsel %vm535_vm2, %v581_v48, %v580_v28  ;;  %v97_v17 = vmul.f32 %v2261_v19, %v2261_v19  ;;  %v98_v54 = vmul.f32 %v2266_v25, %v2266_v25  ;;  %v99_v2 = vmul.f32 %v2271_v51, %v2271_v51 }
  0x30   :  { %v584_v5 = vsel %vm538_vm3, %v583_v6, %v582_v33  ;;  %v101_v10 = vmul.f32 %v2286_v16, %v2286_v16  ;;  %v286_v11 = vmul.f32 %v2253_v12, %v2253_v12  ;;  %v287_v19 = vmul.f32 %v2276_v52, %v2276_v52 }
  0x31   :  { %v586_v9 = vsel %vm541_vm4, %v585_v50, %v584_v5  ;;  %v288_v6 = vmul.f32 %v2291_v21, %v2291_v21  ;;  %v289_v51 = vmul.f32 %v2296_v22, %v2296_v22  ;;  %v290_v14 = vmul.f32 %v2301_v23, %v2301_v23 }
  0x32   :  { %v588_v25 = vsel %vm544_vm5, %v587_v20, %v586_v9  ;;  %v291_v50 = vmul.f32 %v2306_v38, %v2306_v38  ;;  %v292_v12 = vmul.f32 %v2311_v39, %v2311_v39  ;;  %v293_v52 = vmul.f32 %v2318_v45, %v2318_v45 }
  0x33   :  { %v590_v16 = vsel %vm547_vm6, %v589_v34, %v588_v25  ;;  %v350_v44 = vadd.f32 %v286_v11, %v94_v4  ;;  %v351_v24 = vadd.f32 %v287_v19, %v95_v13  ;;  %v352_v15 = vadd.f32 %v288_v6, %v96_v55 }
  0x34   :  { %1800 = vmatmul.mubr.msk.f32.gmra.mrb[2].mxu0 %vm647_vm7, %v590_v16  ;;  %v353_v31 = vadd.f32 %v289_v51, %v97_v17  ;;  %v354_v60 = vadd.f32 %v290_v14, %v98_v54  ;;  %v355_v30 = vadd.f32 %v291_v50, %v99_v2  ;;  %v356_v23 = vadd.f32 %v292_v12, %v100_v7 }
  0x35   :  { %v357_v8 = vadd.f32 %v293_v52, %v101_v10  ;;  %v102_v59 = vmul.f32 %v2328_v0, %v2328_v0  ;;  %v861_v48 = vrot.slane %v351_v24, 7  ;;  %v863_v20 = vrot.slane %v352_v15, 6  ;;  %v2527_v24 = vld [vmem:[%s3533_s0 + $0x40] sm:$0x1]  ;;  %v2532_v15 = vld [vmem:[%s3533_s0 + $0x42] sm:$0x1] }
  0x36   :  { %v865_v28 = vrot.slane %v353_v31, 5  ;;  %v867_v39 = vrot.slane %v354_v60, 4  ;;  %v869_v34 = vrot.slane %v355_v30, 3  ;;  %v871_v33 = vrot.slane %v356_v23, 2  ;;  %3632 = vst [vmem:[#allocation28_spill] sm:$0xff] %v2527_v24  ;;  %3633 = vst [vmem:[#allocation29_spill] sm:$0xff] %v2532_v15 }
  0x37   :  { %v873_v5 = vrot.slane %v357_v8, 1  ;;  %v103_v4 = vmul.f32 %v2340_v32, %v2340_v32  ;;  %v862_v13 = vsel %vm529_vm0, %v861_v48, %v350_v44  ;;  %v104_v55 = vmul.f32 %v2345_v18, %v2345_v18  ;;  %v2537_v31 = vld [vmem:[%s3533_s0 + $0x44] sm:$0x1]  ;;  %v2548_v48 = vld [vmem:[%s3533_s0 + $0x48] sm:$0x1] }
  0x38   :  { %v105_v17 = vmul.f32 %v2360_v35, %v2360_v35  ;;  %v106_v0 = vmul.f32 %v2365_v36, %v2365_v36  ;;  %v864_v54 = vsel %vm532_vm1, %v863_v20, %v862_v13  ;;  %v107_v2 = vmul.f32 %v2370_v43, %v2370_v43  ;;  %3634 = vst [vmem:[#allocation30_spill] sm:$0xff] %v2537_v31  ;;  %v2553_v20 = vld [vmem:[%s3533_s0 + $0x4a] sm:$0x1]  ;;  %v2675_v36 = vld [vmem:[%s3533_s0 + $0x5c] sm:$0x1] }
  0x39   :  { %v108_v7 = vmul.f32 %v2386_v29, %v2386_v29  ;;  %v109_v10 = vmul.f32 %v2391_v1, %v2391_v1  ;;  %v866_v9 = vsel %vm535_vm2, %v865_v28, %v864_v54  ;;  %v294_v11 = vmul.f32 %v2350_v57, %v2350_v57  ;;  %3636 = vst [vmem:[#allocation32_spill] sm:$0xff] %v2548_v48  ;;  %v2558_v28 = vld [vmem:[%s3533_s0 + $0x41] sm:$0x1]  ;;  %v2579_v54 = vld [vmem:[%s3533_s0 + $0x4e] sm:$0x1] }
  0x3a   :  { %v295_v19 = vmul.f32 %v2375_v53, %v2375_v53  ;;  %v296_v6 = vmul.f32 %v2380_v3, %v2380_v3  ;;  %v868_v25 = vsel %vm538_vm3, %v867_v39, %v866_v9  ;;  %v297_v51 = vmul.f32 %v2396_v27, %v2396_v27  ;;  %3637 = vst [vmem:[#allocation33_spill] sm:$0xff] %v2553_v20  ;;  %v2563_v39 = vld [vmem:[%s3533_s0 + $0x43] sm:$0x1]  ;;  %v2584_v9 = vld [vmem:[%s3533_s0 + $0x47] sm:$0x1] }
  0x3b   :  { %v298_v14 = vmul.f32 %v2403_v58, %v2403_v58  ;;  %v299_v50 = vmul.f32 %v2408_v26, %v2408_v26  ;;  %v870_v16 = vsel %vm541_vm4, %v869_v34, %v868_v25  ;;  %v300_v12 = vmul.f32 %v2415_v40, %v2415_v40  ;;  %3638 = vst [vmem:[#allocation34_spill] sm:$0xff] %v2558_v28  ;;  %v2568_v34 = vld [vmem:[%s3533_s0 + $0x45] sm:$0x1]  ;;  %v2649_v1 = vld [vmem:[%s3533_s0 + $0x56] sm:$0x1] }
  0x3c   :  { %v301_v52 = vmul.f32 %v2420_v46, %v2420_v46  ;;  %v358_v44 = vadd.f32 %v294_v11, %v102_v59  ;;  %v872_v60 = vsel %vm544_vm5, %v871_v33, %v870_v16  ;;  %v359_v30 = vadd.f32 %v295_v19, %v103_v4  ;;  %v2543_v59 = vld [vmem:[%s3533_s0 + $0x46] sm:$0x1]  ;;  %3639 = vst [vmem:[#allocation35_spill] sm:$0xff] %v2563_v39  ;;  %v2654_v46 = vld [vmem:[%s3533_s0 + $0x58] sm:$0x1] }
  0x3d   :  { %v360_v23 = vadd.f32 %v296_v6, %v104_v55  ;;  %v361_v8 = vadd.f32 %v297_v51, %v105_v17  ;;  %3635 = vst [vmem:[#allocation31_spill] sm:$0xff] %v2543_v59  ;;  %3640 = vst [vmem:[#allocation36_spill] sm:$0xff] %v2568_v34  ;;  %v874_v33 = vsel %vm547_vm6, %v873_v5, %v872_v60  ;;  %v2574_v17 = vld [vmem:[%s3533_s0 + $0x4c] sm:$0x1]  ;;  %v2589_v5 = vld [vmem:[%s3533_s0 + $0x49] sm:$0x1] }
  0x3e   :  { %v362_v4 = vadd.f32 %v298_v14, %v106_v0  ;;  %v363_v13 = vadd.f32 %v299_v50, %v107_v2  ;;  %v364_v55 = vadd.f32 %v300_v12, %v108_v7  ;;  %3641 = vst [vmem:[#allocation37_spill] sm:$0xff] %v2574_v17  ;;  %3642 = vst [vmem:[#allocation38_spill] sm:$0xff] %v2579_v54  ;;  %v2594_v0 = vld [vmem:[%s3533_s0 + $0x4b] sm:$0x1]  ;;  %1815 = vmatprep.mubr.msk.f32.mxu1 %vm647_vm7, %v874_v33  ;;  %v2600_v6 = vld [vmem:[%s3533_s0 + $0x4d] sm:$0x1] }
  0x3f   :  { %3643 = vst [vmem:[#allocation39_spill] sm:$0xff] %v2584_v9  ;;  %3644 = vst [vmem:[#allocation40_spill] sm:$0xff] %v2589_v5  ;;  %v365_v2 = vadd.f32 %v301_v52, %v109_v10  ;;  %v875_v7 = vrot.slane %v359_v30, 7  ;;  %v877_v11 = vrot.slane %v360_v23, 6  ;;  %v879_v19 = vrot.slane %v361_v8, 5 }
  0x40   :  { %3645 = vst [vmem:[#allocation41_spill] sm:$0xff] %v2594_v0  ;;  %3646 = vst [vmem:[#allocation42_spill] sm:$0xff] %v2600_v6  ;;  %v881_v25 = vrot.slane %v362_v4, 4  ;;  %v883_v51 = vrot.slane %v363_v13, 3  ;;  %v885_v14 = vrot.slane %v364_v55, 2  ;;  %v238_v16 = vadd.f32 %v2558_v28, %v2527_v24 }
  0x41   :  { %v2605_v50 = vld [vmem:[%s3533_s0 + $0x4f] sm:$0x1]  ;;  %v876_v10 = vsel %vm529_vm0, %v875_v7, %v358_v44  ;;  %v887_v12 = vrot.slane %v365_v2, 1  ;;  %v239_v52 = vadd.f32 %v2563_v39, %v2532_v15  ;;  %v240_v60 = vadd.f32 %v2568_v34, %v2537_v31  ;;  %v2617_v30 = vld [vmem:[%s3533_s0 + $0x50] sm:$0x1]  ;;  %3652 = vst [vmem:[#allocation48_spill] sm:$0xff] %v2649_v1 }
  0x42   :  { %3647 = vst [vmem:[#allocation43_spill] sm:$0xff] %v2605_v50  ;;  %3648 = vst [vmem:[#allocation44_spill] sm:$0xff] %v2617_v30  ;;  %v878_v23 = vsel %vm532_vm1, %v877_v11, %v876_v10  ;;  %v241_v8 = vadd.f32 %v2584_v9, %v2543_v59  ;;  %v242_v44 = vadd.f32 %v2589_v5, %v2548_v48  ;;  %v2629_v4 = vld [vmem:[%s3533_s0 + $0x52] sm:$0x1]  ;;  %v2634_v13 = vld [vmem:[%s3533_s0 + $0x54] sm:$0x1] }
  0x43   :  { %v243_v33 = vadd.f32 %v2594_v0, %v2553_v20  ;;  %3649 = vst [vmem:[#allocation45_spill] sm:$0xff] %v2629_v4  ;;  %3650 = vst [vmem:[#allocation46_spill] sm:$0xff] %v2634_v13  ;;  %v2639_v55 = vld [vmem:[%s3533_s0 + $0x51] sm:$0x1]  ;;  %v880_v2 = vsel %vm535_vm2, %v879_v19, %v878_v23  ;;  %v244_v7 = vadd.f32 %v2600_v6, %v2574_v17  ;;  %v591_v10 = vrot.slane %v239_v52, 7 }
  0x44   :  { %3651 = vst [vmem:[#allocation47_spill] sm:$0xff] %v2639_v55  ;;  %v245_v11 = vadd.f32 %v2605_v50, %v2579_v54  ;;  %3653 = vst [vmem:[#allocation49_spill] sm:$0xff] %v2654_v46  ;;  %v2659_v19 = vld [vmem:[%s3533_s0 + $0x5a] sm:$0x1]  ;;  %v2664_v23 = vld [vmem:[%s3533_s0 + $0x53] sm:$0x1]  ;;  %v882_v29 = vsel %vm538_vm3, %v881_v25, %v880_v2  ;;  %v110_v21 = vmul.f32 %v2527_v24, %v2527_v24 }
  0x45   :  { %3654 = vst [vmem:[#allocation50_spill] sm:$0xff] %v2659_v19  ;;  %3655 = vst [vmem:[#allocation51_spill] sm:$0xff] %v2664_v23  ;;  %v2669_v52 = vld [vmem:[%s3533_s0 + $0x55] sm:$0x1]  ;;  %v593_v40 = vrot.slane %v240_v60, 6  ;;  %v595_v43 = vrot.slane %v241_v8, 5  ;;  %v884_v25 = vsel %vm541_vm4, %v883_v51, %v882_v29  ;;  %v592_v60 = vsel %vm529_vm0, %v591_v10, %v238_v16 }
  0x46   :  { %3656 = vst [vmem:[#allocation52_spill] sm:$0xff] %v2669_v52  ;;  %v597_v26 = vrot.slane %v242_v44, 4  ;;  %3657 = vst [vmem:[#allocation53_spill] sm:$0xff] %v2675_v36  ;;  %v2680_v58 = vld [vmem:[%s3533_s0 + $0x5e] sm:$0x1]  ;;  %v599_v8 = vrot.slane %v243_v33, 3  ;;  %v886_v18 = vsel %vm544_vm5, %v885_v14, %v884_v25  ;;  %v246_v16 = vadd.f32 %v2639_v55, %v2617_v30 }
  0x47   :  { %3658 = vst [vmem:[#allocation54_spill] sm:$0xff] %v2680_v58  ;;  %v2685_v35 = vld [vmem:[%s3533_s0 + $0x57] sm:$0x1]  ;;  %v601_v44 = vrot.slane %v244_v7, 2  ;;  %v2692_v2 = vld [vmem:[%s3533_s0 + $0x59] sm:$0x1]  ;;  %v594_v3 = vsel %vm532_vm1, %v593_v40, %v592_v60  ;;  %v888_v33 = vsel %vm547_vm6, %v887_v12, %v886_v18  ;;  %v247_v40 = vadd.f32 %v2664_v23, %v2629_v4 }
  0x48   :  { %3659 = vst [vmem:[#allocation55_spill] sm:$0xff] %v2685_v35  ;;  %3660 = vst [vmem:[#allocation56_spill] sm:$0xff] %v2692_v2  ;;  %v2697_v27 = vld [vmem:[%s3533_s0 + $0x5b] sm:$0x1]  ;;  %v603_v32 = vrot.slane %v245_v11, 1  ;;  %v596_v14 = vsel %vm535_vm2, %v595_v43, %v594_v3  ;;  %v248_v7 = vadd.f32 %v2669_v52, %v2634_v13  ;;  %1816 = vmatmul.mubr.msk.f32.gmra.mrb[2].mxu1 %vm647_vm7, %v888_v33 }
  0x49   :  { %3661 = vst [vmem:[#allocation57_spill] sm:$0xff] %v2697_v27  ;;  %v2704_v29 = vld [vmem:[%s3533_s0 + $0x5d] sm:$0x1]  ;;  %v2709_v51 = vld [vmem:[%s3533_s0 + $0x5f] sm:$0x1]  ;;  %v598_v11 = vsel %vm538_vm3, %v597_v26, %v596_v14  ;;  %v249_v10 = vadd.f32 %v2685_v35, %v2649_v1  ;;  %v250_v25 = vadd.f32 %v2692_v2, %v2654_v46  ;;  %v251_v18 = vadd.f32 %v2697_v27, %v2659_v19 }
  0x4a   :  { %3662 = vst [vmem:[#allocation58_spill] sm:$0xff] %v2704_v29  ;;  %3663 = vst [vmem:[#allocation59_spill] sm:$0xff] %v2709_v51  ;;  %v600_v43 = vsel %vm541_vm4, %v599_v8, %v598_v11  ;;  %v252_v3 = vadd.f32 %v2704_v29, %v2675_v36  ;;  %v253_v12 = vadd.f32 %v2709_v51, %v2680_v58  ;;  %v605_v60 = vrot.slane %v247_v40, 7 }
  0x4b   :  { %v602_v26 = vsel %vm544_vm5, %v601_v44, %v600_v43  ;;  %v607_v33 = vrot.slane %v248_v7, 6  ;;  %v609_v14 = vrot.slane %v249_v10, 5  ;;  %v611_v53 = vrot.slane %v250_v25, 4 }
  0x4c   :  { %v604_v57 = vsel %vm547_vm6, %v603_v32, %v602_v26  ;;  %v606_v45 = vsel %vm529_vm0, %v605_v60, %v246_v16  ;;  %v613_v38 = vrot.slane %v251_v18, 3  ;;  %v615_v22 = vrot.slane %v252_v3, 2 }
  0x4d   :  { %1802 = vmatprep.mubr.msk.f32.mxu0 %vm647_vm7, %v604_v57  ;;  %v608_v8 = vsel %vm532_vm1, %v607_v33, %v606_v45  ;;  %v617_v11 = vrot.slane %v253_v12, 1  ;;  %v111_v44 = vmul.f32 %v2532_v15, %v2532_v15  ;;  %v112_v32 = vmul.f32 %v2537_v31, %v2537_v31 }
  0x4e   :  { %v610_v40 = vsel %vm535_vm2, %v609_v14, %v608_v8  ;;  %v113_v16 = vmul.f32 %v2543_v59, %v2543_v59  ;;  %v114_v57 = vmul.f32 %v2548_v48, %v2548_v48  ;;  %v115_v7 = vmul.f32 %v2553_v20, %v2553_v20 }
  0x4f   :  { %v612_v45 = vsel %vm538_vm3, %v611_v53, %v610_v40  ;;  %v116_v10 = vmul.f32 %v2574_v17, %v2574_v17  ;;  %v117_v25 = vmul.f32 %v2579_v54, %v2579_v54  ;;  %v302_v43 = vmul.f32 %v2558_v28, %v2558_v28 }
  0x50   :  { %v614_v18 = vsel %vm541_vm4, %v613_v38, %v612_v45  ;;  %v303_v3 = vmul.f32 %v2563_v39, %v2563_v39  ;;  %v304_v53 = vmul.f32 %v2568_v34, %v2568_v34  ;;  %v305_v60 = vmul.f32 %v2584_v9, %v2584_v9 }
  0x51   :  { %v616_v12 = vsel %vm544_vm5, %v615_v22, %v614_v18  ;;  %v306_v26 = vmul.f32 %v2589_v5, %v2589_v5  ;;  %v307_v38 = vmul.f32 %v2594_v0, %v2594_v0  ;;  %v308_v14 = vmul.f32 %v2600_v6, %v2600_v6 }
  0x52   :  { %v618_v33 = vsel %vm547_vm6, %v617_v11, %v616_v12  ;;  %v309_v8 = vmul.f32 %v2605_v50, %v2605_v50  ;;  %v366_v40 = vadd.f32 %v302_v43, %v110_v21  ;;  %v367_v22 = vadd.f32 %v303_v3, %v111_v44 }
  0x53   :  { %1803 = vmatmul.mubr.msk.f32.gmra.mrb[4].mxu0 %vm647_vm7, %v618_v33  ;;  %v368_v45 = vadd.f32 %v304_v53, %v112_v32  ;;  %v369_v18 = vadd.f32 %v305_v60, %v113_v16  ;;  %v370_v54 = vadd.f32 %v306_v26, %v114_v57  ;;  %v371_v17 = vadd.f32 %v307_v38, %v115_v7 }
  0x54   :  { %v372_v20 = vadd.f32 %v308_v14, %v116_v10  ;;  %v373_v48 = vadd.f32 %v309_v8, %v117_v25  ;;  %v118_v0 = vmul.f32 %v2617_v30, %v2617_v30  ;;  %v889_v11 = vrot.slane %v367_v22, 7  ;;  %v2820_v8 = vld [vmem:[%s3533_s0 + $0x62] sm:$0x1] }
  0x55   :  { %v891_v12 = vrot.slane %v368_v45, 6  ;;  %v893_v5 = vrot.slane %v369_v18, 5  ;;  %v895_v6 = vrot.slane %v370_v54, 4  ;;  %v897_v59 = vrot.slane %v371_v17, 3  ;;  %v2831_v18 = vld [vmem:[%s3533_s0 + $0x66] sm:$0x1] }
  0x56   :  { %v899_v9 = vrot.slane %v372_v20, 2  ;;  %v901_v50 = vrot.slane %v373_v48, 1  ;;  %v119_v21 = vmul.f32 %v2629_v4, %v2629_v4  ;;  %v890_v44 = vsel %vm529_vm0, %v889_v11, %v366_v40  ;;  %3664 = vst [vmem:[#allocation60_spill] sm:$0xff] %v2831_v18  ;;  %v2836_v11 = vld [vmem:[%s3533_s0 + $0x68] sm:$0x1] }
  0x57   :  { %v120_v32 = vmul.f32 %v2634_v13, %v2634_v13  ;;  %v121_v16 = vmul.f32 %v2649_v1, %v2649_v1  ;;  %v122_v57 = vmul.f32 %v2654_v46, %v2654_v46  ;;  %v892_v7 = vsel %vm532_vm1, %v891_v12, %v890_v44  ;;  %3665 = vst [vmem:[#allocation61_spill] sm:$0xff] %v2836_v11  ;;  %v2841_v12 = vld [vmem:[%s3533_s0 + $0x6a] sm:$0x1]  ;;  %v2856_v44 = vld [vmem:[%s3533_s0 + $0x65] sm:$0x1] }
  0x58   :  { %v123_v20 = vmul.f32 %v2659_v19, %v2659_v19  ;;  %v124_v48 = vmul.f32 %v2675_v36, %v2675_v36  ;;  %v125_v17 = vmul.f32 %v2680_v58, %v2680_v58  ;;  %v894_v54 = vsel %vm535_vm2, %v893_v5, %v892_v7  ;;  %3666 = vst [vmem:[#allocation62_spill] sm:$0xff] %v2841_v12  ;;  %v2942_v19 = vld [vmem:[%s3533_s0 + $0x78] sm:$0x1]  ;;  %v2968_v13 = vld [vmem:[%s3533_s0 + $0x7e] sm:$0x1] }
  0x59   :  { %v310_v10 = vmul.f32 %v2639_v55, %v2639_v55  ;;  %v311_v25 = vmul.f32 %v2664_v23, %v2664_v23  ;;  %v312_v43 = vmul.f32 %v2669_v52, %v2669_v52  ;;  %v896_v3 = vsel %vm538_vm3, %v895_v6, %v894_v54  ;;  %v2815_v6 = vld [vmem:[%s3533_s0 + $0x60] sm:$0x1]  ;;  %3674 = vst [vmem:[#allocation70_spill] sm:$0xff] %v2968_v13  ;;  %v2973_v52 = vld [vmem:[%s3533_s0 + $0x77] sm:$0x1] }
  0x5a   :  { %v313_v53 = vmul.f32 %v2685_v35, %v2685_v35  ;;  %v314_v60 = vmul.f32 %v2692_v2, %v2692_v2  ;;  %v315_v5 = vmul.f32 %v2697_v27, %v2697_v27  ;;  %v898_v26 = vsel %vm541_vm4, %v897_v59, %v896_v3  ;;  %v2825_v59 = vld [vmem:[%s3533_s0 + $0x64] sm:$0x1]  ;;  %v2963_v35 = vld [vmem:[%s3533_s0 + $0x7c] sm:$0x1]  ;;  %v2985_v4 = vld [vmem:[%s3533_s0 + $0x7b] sm:$0x1] }
  0x5b   :  { %v316_v38 = vmul.f32 %v2704_v29, %v2704_v29  ;;  %v317_v33 = vmul.f32 %v2709_v51, %v2709_v51  ;;  %v374_v14 = vadd.f32 %v310_v10, %v118_v0  ;;  %v900_v40 = vsel %vm544_vm5, %v899_v9, %v898_v26  ;;  %v2846_v9 = vld [vmem:[%s3533_s0 + $0x61] sm:$0x1]  ;;  %v2862_v10 = vld [vmem:[%s3533_s0 + $0x6c] sm:$0x1]  ;;  %v2937_v29 = vld [vmem:[%s3533_s0 + $0x76] sm:$0x1] }
  0x5c   :  { %v375_v22 = vadd.f32 %v311_v25, %v119_v21  ;;  %v376_v45 = vadd.f32 %v312_v43, %v120_v32  ;;  %v377_v0 = vadd.f32 %v313_v53, %v121_v16  ;;  %v2851_v21 = vld [vmem:[%s3533_s0 + $0x63] sm:$0x1]  ;;  %v902_v32 = vsel %vm547_vm6, %v901_v50, %v900_v40  ;;  %3667 = vst [vmem:[#allocation63_spill] sm:$0xff] %v2862_v10  ;;  %v2867_v25 = vld [vmem:[%s3533_s0 + $0x6e] sm:$0x1] }
  0x5d   :  { %v378_v16 = vadd.f32 %v314_v60, %v122_v57  ;;  %v379_v7 = vadd.f32 %v315_v5, %v123_v20  ;;  %v380_v54 = vadd.f32 %v316_v38, %v124_v48  ;;  %3668 = vst [vmem:[#allocation64_spill] sm:$0xff] %v2867_v25  ;;  %v2872_v43 = vld [vmem:[%s3533_s0 + $0x67] sm:$0x1]  ;;  %v2877_v50 = vld [vmem:[%s3533_s0 + $0x69] sm:$0x1]  ;;  %1818 = vmatprep.mubr.msk.f32.mxu1 %vm647_vm7, %v902_v32 }
  0x5e   :  { %3669 = vst [vmem:[#allocation65_spill] sm:$0xff] %v2872_v43  ;;  %3670 = vst [vmem:[#allocation66_spill] sm:$0xff] %v2877_v50  ;;  %v2882_v57 = vld [vmem:[%s3533_s0 + $0x6b] sm:$0x1]  ;;  %v381_v20 = vadd.f32 %v317_v33, %v125_v17  ;;  %v903_v48 = vrot.slane %v375_v22, 7  ;;  %v905_v3 = vrot.slane %v376_v45, 6  ;;  %v254_v32 = vadd.f32 %v2846_v9, %v2815_v6 }
  0x5f   :  { %3671 = vst [vmem:[#allocation67_spill] sm:$0xff] %v2882_v57  ;;  %v907_v53 = vrot.slane %v377_v0, 5  ;;  %v2888_v60 = vld [vmem:[%s3533_s0 + $0x6d] sm:$0x1]  ;;  %v909_v5 = vrot.slane %v378_v16, 4  ;;  %v911_v26 = vrot.slane %v379_v7, 3  ;;  %v255_v22 = vadd.f32 %v2851_v21, %v2820_v8 }
  0x60   :  { %3672 = vst [vmem:[#allocation68_spill] sm:$0xff] %v2888_v60  ;;  %v913_v38 = vrot.slane %v380_v54, 2  ;;  %v2893_v40 = vld [vmem:[%s3533_s0 + $0x6f] sm:$0x1]  ;;  %v904_v17 = vsel %vm529_vm0, %v903_v48, %v374_v14  ;;  %v915_v33 = vrot.slane %v381_v20, 1  ;;  %v256_v45 = vadd.f32 %v2856_v44, %v2825_v59 }
  0x61   :  { %3673 = vst [vmem:[#allocation69_spill] sm:$0xff] %v2893_v40  ;;  %v2905_v0 = vld [vmem:[%s3533_s0 + $0x70] sm:$0x1]  ;;  %v906_v16 = vsel %vm532_vm1, %v905_v3, %v904_v17  ;;  %v257_v7 = vadd.f32 %v2872_v43, %v2831_v18  ;;  %v258_v14 = vadd.f32 %v2877_v50, %v2836_v11  ;;  %v259_v54 = vadd.f32 %v2882_v57, %v2841_v12  ;;  %v2917_v20 = vld [vmem:[%s3533_s0 + $0x72] sm:$0x1] }
  0x62   :  { %v2922_v48 = vld [vmem:[%s3533_s0 + $0x74] sm:$0x1]  ;;  %v2927_v3 = vld [vmem:[%s3533_s0 + $0x71] sm:$0x1]  ;;  %v908_v17 = vsel %vm535_vm2, %v907_v53, %v906_v16  ;;  %v260_v58 = vadd.f32 %v2888_v60, %v2862_v10  ;;  %v261_v51 = vadd.f32 %v2893_v40, %v2867_v25  ;;  %v619_v36 = vrot.slane %v255_v22, 7 }
  0x63   :  { %v2947_v53 = vld [vmem:[%s3533_s0 + $0x7a] sm:$0x1]  ;;  %v2952_v16 = vld [vmem:[%s3533_s0 + $0x73] sm:$0x1]  ;;  %v2957_v22 = vld [vmem:[%s3533_s0 + $0x75] sm:$0x1]  ;;  %v910_v27 = vsel %vm538_vm3, %v909_v5, %v908_v17  ;;  %v126_v28 = vmul.f32 %v2815_v6, %v2815_v6 }
  0x64   :  { %v621_v46 = vrot.slane %v256_v45, 6  ;;  %v623_v2 = vrot.slane %v257_v7, 5  ;;  %v625_v1 = vrot.slane %v258_v14, 4  ;;  %v912_v5 = vsel %vm541_vm4, %v911_v26, %v910_v27  ;;  %v2980_v17 = vld [vmem:[%s3533_s0 + $0x79] sm:$0x1] }
  0x65   :  { %v620_v45 = vsel %vm529_vm0, %v619_v36, %v254_v32  ;;  %v627_v7 = vrot.slane %v259_v54, 3  ;;  %v629_v14 = vrot.slane %v260_v58, 2  ;;  %v914_v23 = vsel %vm544_vm5, %v913_v38, %v912_v5  ;;  %v2992_v27 = vld [vmem:[%s3533_s0 + $0x7d] sm:$0x1]  ;;  %v2997_v36 = vld [vmem:[%s3533_s0 + $0x7f] sm:$0x1] }
  0x66   :  { %v622_v30 = vsel %vm532_vm1, %v621_v46, %v620_v45  ;;  %v631_v55 = vrot.slane %v261_v51, 1  ;;  %3675 = vst [vmem:[#allocation71_spill] sm:$0xff] %v2997_v36  ;;  %v262_v58 = vadd.f32 %v2927_v3, %v2905_v0  ;;  %v916_v26 = vsel %vm547_vm6, %v915_v33, %v914_v23 }
  0x67   :  { %v624_v38 = vsel %vm535_vm2, %v623_v2, %v622_v30  ;;  %v263_v46 = vadd.f32 %v2952_v16, %v2917_v20  ;;  %v264_v51 = vadd.f32 %v2957_v22, %v2922_v48  ;;  %1819 = vmatmul.mubr.msk.f32.gmra.mrb[4].mxu1 %vm647_vm7, %v916_v26  ;;  %v265_v54 = vadd.f32 %v2973_v52, %v2937_v29 }
  0x68   :  { %v626_v32 = vsel %vm538_vm3, %v625_v1, %v624_v38  ;;  %v266_v5 = vadd.f32 %v2980_v17, %v2942_v19  ;;  %v267_v23 = vadd.f32 %v2985_v4, %v2947_v53  ;;  %v268_v2 = vadd.f32 %v2992_v27, %v2963_v35 }
  0x69   :  { %v628_v30 = vsel %vm541_vm4, %v627_v7, %v626_v32  ;;  %v269_v33 = vadd.f32 %v2997_v36, %v2968_v13  ;;  %v633_v45 = vrot.slane %v263_v46, 7  ;;  %v635_v26 = vrot.slane %v264_v51, 6 }
  0x6a   :  { %v630_v1 = vsel %vm544_vm5, %v629_v14, %v628_v30  ;;  %v637_v38 = vrot.slane %v265_v54, 5  ;;  %v639_v31 = vrot.slane %v266_v5, 4  ;;  %v641_v39 = vrot.slane %v267_v23, 3 }
  0x6b   :  { %v632_v34 = vsel %vm547_vm6, %v631_v55, %v630_v1  ;;  %v634_v15 = vsel %vm529_vm0, %v633_v45, %v262_v58  ;;  %v643_v24 = vrot.slane %v268_v2, 2  ;;  %v645_v32 = vrot.slane %v269_v33, 1 }
  0x6c   :  { %1805 = vmatprep.mubr.msk.f32.mxu0 %vm647_vm7, %v632_v34  ;;  %v636_v7 = vsel %vm532_vm1, %v635_v26, %v634_v15  ;;  %v127_v14 = vmul.f32 %v2820_v8, %v2820_v8  ;;  %v128_v55 = vmul.f32 %v2825_v59, %v2825_v59  ;;  %v129_v58 = vmul.f32 %v2831_v18, %v2831_v18 }
  0x6d   :  { %v638_v46 = vsel %vm535_vm2, %v637_v38, %v636_v7  ;;  %v130_v34 = vmul.f32 %v2836_v11, %v2836_v11  ;;  %v131_v51 = vmul.f32 %v2841_v12, %v2841_v12  ;;  %v132_v54 = vmul.f32 %v2862_v10, %v2862_v10 }
  0x6e   :  { %v640_v15 = vsel %vm538_vm3, %v639_v31, %v638_v46  ;;  %v133_v5 = vmul.f32 %v2867_v25, %v2867_v25  ;;  %v318_v30 = vmul.f32 %v2846_v9, %v2846_v9  ;;  %v319_v2 = vmul.f32 %v2851_v21, %v2851_v21 }
  0x6f   :  { %v642_v23 = vsel %vm541_vm4, %v641_v39, %v640_v15  ;;  %v320_v31 = vmul.f32 %v2856_v44, %v2856_v44  ;;  %v321_v45 = vmul.f32 %v2872_v43, %v2872_v43  ;;  %v322_v1 = vmul.f32 %v2877_v50, %v2877_v50 }
  0x70   :  { %v644_v33 = vsel %vm544_vm5, %v643_v24, %v642_v23  ;;  %v323_v39 = vmul.f32 %v2882_v57, %v2882_v57  ;;  %v324_v38 = vmul.f32 %v2888_v60, %v2888_v60  ;;  %v325_v7 = vmul.f32 %v2893_v40, %v2893_v40 }
  0x71   :  { %v646_v26 = vsel %vm547_vm6, %v645_v32, %v644_v33  ;;  %v382_v46 = vadd.f32 %v318_v30, %v126_v28  ;;  %v383_v24 = vadd.f32 %v319_v2, %v127_v14  ;;  %v384_v15 = vadd.f32 %v320_v31, %v128_v55 }
  0x72   :  { %1806 = vmatmul.mubr.msk.f32.gmra.mrb[6].mxu0 %vm647_vm7, %v646_v26  ;;  %v385_v23 = vadd.f32 %v321_v45, %v129_v58  ;;  %v386_v25 = vadd.f32 %v322_v1, %v130_v34  ;;  %v387_v10 = vadd.f32 %v323_v39, %v131_v51  ;;  %v388_v12 = vadd.f32 %v324_v38, %v132_v54 }
  0x73   :  { %v389_v11 = vadd.f32 %v325_v7, %v133_v5  ;;  %v134_v57 = vmul.f32 %v2905_v0, %v2905_v0  ;;  %v917_v32 = vrot.slane %v383_v24, 7  ;;  %v919_v33 = vrot.slane %v384_v15, 6 }
  0x74   :  { %v921_v50 = vrot.slane %v385_v23, 5  ;;  %v923_v60 = vrot.slane %v386_v25, 4  ;;  %v925_v18 = vrot.slane %v387_v10, 3  ;;  %v927_v43 = vrot.slane %v388_v12, 2 }
  0x75   :  { %v929_v40 = vrot.slane %v389_v11, 1  ;;  %v135_v28 = vmul.f32 %v2917_v20, %v2917_v20  ;;  %v918_v14 = vsel %vm529_vm0, %v917_v32, %v382_v46  ;;  %v136_v55 = vmul.f32 %v2922_v48, %v2922_v48 }
  0x76   :  { %v137_v58 = vmul.f32 %v2937_v29, %v2937_v29  ;;  %v138_v34 = vmul.f32 %v2942_v19, %v2942_v19  ;;  %v920_v51 = vsel %vm532_vm1, %v919_v33, %v918_v14  ;;  %v139_v12 = vmul.f32 %v2947_v53, %v2947_v53 }
  0x77   :  { %v140_v11 = vmul.f32 %v2963_v35, %v2963_v35  ;;  %v141_v10 = vmul.f32 %v2968_v13, %v2968_v13  ;;  %v922_v25 = vsel %vm535_vm2, %v921_v50, %v920_v51  ;;  %v326_v54 = vmul.f32 %v2927_v3, %v2927_v3 }
  0x78   :  { %v327_v5 = vmul.f32 %v2952_v16, %v2952_v16  ;;  %v328_v30 = vmul.f32 %v2957_v22, %v2957_v22  ;;  %v924_v2 = vsel %vm538_vm3, %v923_v60, %v922_v25  ;;  %v329_v31 = vmul.f32 %v2973_v52, %v2973_v52 }
  0x79   :  { %v330_v45 = vmul.f32 %v2980_v17, %v2980_v17  ;;  %v331_v50 = vmul.f32 %v2985_v4, %v2985_v4  ;;  %v926_v1 = vsel %vm541_vm4, %v925_v18, %v924_v2  ;;  %v332_v39 = vmul.f32 %v2992_v27, %v2992_v27 }
  0x7a   :  { %v333_v26 = vmul.f32 %v2997_v36, %v2997_v36  ;;  %v390_v38 = vadd.f32 %v326_v54, %v134_v57  ;;  %v928_v60 = vsel %vm544_vm5, %v927_v43, %v926_v1  ;;  %v391_v7 = vadd.f32 %v327_v5, %v135_v28  ;;  %v1920_v43 = vld [vmem:[%s3533_s0] sm:$0x1]  ;;  %v1921_v57 = vld [vmem:[%s3533_s0 + $0x1] sm:$0x1]  ;;  %v1929_v1 = vld [vmem:[%s3533_s0 + $0x9] sm:$0x1] }
  0x7b   :  { %v392_v46 = vadd.f32 %v328_v30, %v136_v55  ;;  %v393_v24 = vadd.f32 %v329_v31, %v137_v58  ;;  %v930_v15 = vsel %vm547_vm6, %v929_v40, %v928_v60  ;;  %v394_v23 = vadd.f32 %v330_v45, %v138_v34  ;;  %v1922_v58 = vld [vmem:[%s3533_s0 + $0x2] sm:$0x1]  ;;  %v1923_v34 = vld [vmem:[%s3533_s0 + $0x3] sm:$0x1]  ;;  %v1926_v30 = vld [vmem:[%s3533_s0 + $0x6] sm:$0x1] }
  0x7c   :  { %v395_v32 = vadd.f32 %v331_v50, %v139_v12  ;;  %v396_v33 = vadd.f32 %v332_v39, %v140_v11  ;;  %1821 = vmatprep.mubr.msk.f32.mxu1 %vm647_vm7, %v930_v15  ;;  %v397_v18 = vadd.f32 %v333_v26, %v141_v10  ;;  %v931_v14 = vrot.slane %v391_v7, 7  ;;  %v1924_v11 = vld [vmem:[%s3533_s0 + $0x4] sm:$0x1]  ;;  %v1925_v10 = vld [vmem:[%s3533_s0 + $0x5] sm:$0x1] }
  0x7d   :  { %v933_v51 = vrot.slane %v392_v46, 6  ;;  %v935_v25 = vrot.slane %v393_v24, 5  ;;  %v937_v2 = vrot.slane %v394_v23, 4  ;;  %v398_v40 = vmax.f32 %v1920_v43, %v1921_v57  ;;  %v1927_v31 = vld [vmem:[%s3533_s0 + $0x7] sm:$0x1] }
  0x7e   :  { %v939_v13 = vrot.slane %v395_v32, 3  ;;  %v941_v36 = vrot.slane %v396_v33, 2  ;;  %v932_v28 = vsel %vm529_vm0, %v931_v14, %v390_v38  ;;  %v943_v55 = vrot.slane %v397_v18, 1  ;;  %v1928_v50 = vld [vmem:[%s3533_s0 + $0x8] sm:$0x1] }
  0x7f   :  { %v399_v12 = vmax.f32 %v1922_v58, %v1923_v34  ;;  %v400_v54 = vmax.f32 %v1924_v11, %v1925_v10  ;;  %v934_v5 = vsel %vm532_vm1, %v933_v51, %v932_v28  ;;  %v401_v45 = vmax.f32 %v1926_v30, %v1927_v31  ;;  %v1930_v26 = vld [vmem:[%s3533_s0 + $0xa] sm:$0x1]  ;;  %v1931_v38 = vld [vmem:[%s3533_s0 + $0xb] sm:$0x1]  ;;  %v1932_v46 = vld [vmem:[%s3533_s0 + $0xc] sm:$0x1] }
  0x80   :  { %v402_v39 = vmax.f32 %v1928_v50, %v1929_v1  ;;  %v403_v60 = vmax.f32 %v1930_v26, %v1931_v38  ;;  %v936_v7 = vsel %vm535_vm2, %v935_v25, %v934_v5  ;;  %v1933_v24 = vld [vmem:[%s3533_s0 + $0xd] sm:$0x1]  ;;  %v1934_v23 = vld [vmem:[%s3533_s0 + $0xe] sm:$0x1]  ;;  %v1935_v32 = vld [vmem:[%s3533_s0 + $0xf] sm:$0x1]  ;;  %v3676_v30 = vmax.f32 %v2052_v41, %v2096_v61 }
  0x81   :  { %v404_v15 = vmax.f32 %v1932_v46, %v1933_v24  ;;  %v405_v33 = vmax.f32 %v1934_v23, %v1935_v32  ;;  %v1132_v18 = vrot.slane %v399_v12, 7  ;;  %v938_v14 = vsel %vm538_vm3, %v937_v2, %v936_v7  ;;  %v3685_v38 = vld [vmem:[#allocation3_spill] sm:$0xff]  ;;  %v3688_v24 = vld [vmem:[#allocation4_spill] sm:$0xff]  ;;  %v1936_v32 = vld [vmem:[%s3533_s0 + $0x20] sm:$0x1] }
  0x82   :  { %v1134_v51 = vrot.slane %v400_v54, 6  ;;  %v1136_v25 = vrot.slane %v401_v45, 5  ;;  %v1138_v43 = vrot.slane %v402_v39, 4  ;;  %v940_v57 = vsel %vm541_vm4, %v939_v13, %v938_v14  ;;  %v3682_v39 = vld [vmem:[#allocation2_spill] sm:$0xff] }
  0x83   :  { %v1133_v28 = vsel %vm529_vm0, %v1132_v18, %v398_v40  ;;  %v1140_v58 = vrot.slane %v403_v60, 3  ;;  %v1142_v34 = vrot.slane %v404_v15, 2  ;;  %v942_v11 = vsel %vm544_vm5, %v941_v36, %v940_v57  ;;  %v3686_v60 = vld [vmem:[#allocation7_spill] sm:$0xff]  ;;  %v1938_v14 = vld [vmem:[%s3533_s0 + $0x22] sm:$0x1] }
  0x84   :  { %v1135_v10 = vsel %vm532_vm1, %v1134_v51, %v1133_v28  ;;  %v1144_v5 = vrot.slane %v405_v33, 1  ;;  %v1146_v12 = vrot.slane %v3676_v30, 7  ;;  %v944_v2 = vsel %vm547_vm6, %v943_v55, %v942_v11  ;;  %v3680_v55 = vld [vmem:[#allocation5_spill] sm:$0xff]  ;;  %v1937_v33 = vld [vmem:[%s3533_s0 + $0x21] sm:$0x1] }
  0x85   :  { %v1137_v54 = vsel %vm535_vm2, %v1136_v25, %v1135_v10  ;;  %v3677_v13 = vmax.f32 %v2057_v42, %v2101_v62  ;;  %v3678_v40 = vmax.f32 %v2063_v47, %v2106_v63  ;;  %1822 = vmatmul.mubr.msk.f32.gmra.mrb[6].mxu1 %vm647_vm7, %v944_v2  ;;  %v3679_v41 = vmax.f32 %v2047_v37, %v2090_v56  ;;  %v3683_v42 = vld [vmem:[#allocation6_spill] sm:$0xff]  ;;  %v3689_v37 = vld [vmem:[#allocation8_spill] sm:$0xff]  ;;  %v1943_v2 = vld [vmem:[%s3533_s0 + $0x29] sm:$0x1] }
  0x86   :  { %v1139_v36 = vsel %vm538_vm3, %v1138_v43, %v1137_v54  ;;  %v3681_v50 = vmax.f32 %v2069_v49, %v3680_v55  ;;  %v3684_v62 = vmax.f32 %v3682_v39, %v3683_v42  ;;  %v3687_v7 = vmax.f32 %v3685_v38, %v3686_v60  ;;  %v1939_v51 = vld [vmem:[%s3533_s0 + $0x23] sm:$0x1]  ;;  %v1940_v28 = vld [vmem:[%s3533_s0 + $0x24] sm:$0x1]  ;;  %v1941_v11 = vld [vmem:[%s3533_s0 + $0x26] sm:$0x1] }
  0x87   :  { %v1148_v31 = vrot.slane %v3677_v13, 6  ;;  %v1150_v45 = vrot.slane %v3678_v40, 5  ;;  %v1147_v61 = vsel %vm529_vm0, %v1146_v12, %v3679_v41  ;;  %v1141_v47 = vsel %vm541_vm4, %v1140_v58, %v1139_v36  ;;  %v3691_v58 = vld [vmem:[#allocation9_spill] sm:$0xff]  ;;  %v3692_v10 = vld [vmem:[#allocation10_spill] sm:$0xff]  ;;  %v1944_v13 = vld [vmem:[%s3533_s0 + $0x2a] sm:$0x1] }
  0x88   :  { %v1152_v1 = vrot.slane %v3681_v50, 4  ;;  %v1154_v26 = vrot.slane %v3684_v62, 3  ;;  %v1156_v46 = vrot.slane %v3687_v7, 2  ;;  %v3690_v56 = vmax.f32 %v3688_v24, %v3689_v37  ;;  %v1945_v41 = vld [vmem:[%s3533_s0 + $0x2c] sm:$0x1] }
  0x89   :  { %v1149_v63 = vsel %vm532_vm1, %v1148_v31, %v1147_v61  ;;  %v1143_v23 = vsel %vm544_vm5, %v1142_v34, %v1141_v47  ;;  %v414_v18 = vmax.f32 %v1936_v32, %v1937_v33  ;;  %v415_v25 = vmax.f32 %v1938_v14, %v1939_v51  ;;  %v3693_v31 = vld [vmem:[#allocation11_spill] sm:$0xff]  ;;  %v1948_v37 = vld [vmem:[%s3533_s0 + $0x30] sm:$0x1] }
  0x8a   :  { %v1158_v15 = vrot.slane %v3690_v56, 1  ;;  %v1151_v49 = vsel %vm535_vm2, %v1150_v45, %v1149_v63  ;;  %v1145_v43 = vsel %vm547_vm6, %v1144_v5, %v1143_v23  ;;  %v416_v34 = vmax.f32 %v1940_v28, %v3691_v58  ;;  %v1942_v5 = vld [vmem:[%s3533_s0 + $0x28] sm:$0x1]  ;;  %v1946_v61 = vld [vmem:[%s3533_s0 + $0x2d] sm:$0x1]  ;;  %v3698_v33 = vld [vmem:[#allocation20_spill] sm:$0xff] }
  0x8b   :  { %v1153_v57 = vsel %vm538_vm3, %v1152_v1, %v1151_v49  ;;  %v417_v30 = vmax.f32 %v1941_v11, %v3692_v10  ;;  %1828 = vmatprep.mubr.msk.f32.mxu0 %vm647_vm7, %v1145_v43  ;;  %1844 = vmatprep.mubr.msk.f32.mxu1 %vm647_vm7, %v1145_v43  ;;  %v418_v54 = vmax.f32 %v1942_v5, %v1943_v2  ;;  %v1160_v45 = vrot.slane %v415_v25, 7  ;;  %v1947_v50 = vld [vmem:[%s3533_s0 + $0x2e] sm:$0x1]  ;;  %v3694_v1 = vld [vmem:[#allocation12_spill] sm:$0xff]  ;;  %v3697_v49 = vld [vmem:[#allocation13_spill] sm:$0xff] }
  0x8c   :  { %v1155_v12 = vsel %vm541_vm4, %v1154_v26, %v1153_v57  ;;  %v419_v40 = vmax.f32 %v1944_v13, %v3693_v31  ;;  %v420_v55 = vmax.f32 %v1945_v41, %v1946_v61  ;;  %v421_v39 = vmax.f32 %v1947_v50, %v3694_v1  ;;  %v3695_v56 = vld [vmem:[#allocation15_spill] sm:$0xff]  ;;  %v3701_v43 = vld [vmem:[#allocation16_spill] sm:$0xff]  ;;  %v3703_v58 = vld [vmem:[#allocation17_spill] sm:$0xff] }
  0x8d   :  { %v1157_v36 = vsel %vm544_vm5, %v1156_v46, %v1155_v12  ;;  %v1162_v42 = vrot.slane %v416_v34, 6  ;;  %v1161_v26 = vsel %vm529_vm0, %v1160_v45, %v414_v18  ;;  %v1164_v47 = vrot.slane %v417_v30, 5  ;;  %v3696_v23 = vld [vmem:[#allocation19_spill] sm:$0xff]  ;;  %v3699_v18 = vld [vmem:[#allocation14_spill] sm:$0xff]  ;;  %v3702_v28 = vld [vmem:[#allocation24_spill] sm:$0xff] }
  0x8e   :  { %v1159_v62 = vsel %vm547_vm6, %v1158_v15, %v1157_v36  ;;  %v1166_v63 = vrot.slane %v418_v54, 4  ;;  %v1168_v60 = vrot.slane %v419_v40, 3  ;;  %v1170_v7 = vrot.slane %v420_v55, 2  ;;  %v3700_v25 = vld [vmem:[#allocation23_spill] sm:$0xff]  ;;  %v3704_v11 = vld [vmem:[#allocation25_spill] sm:$0xff]  ;;  %v3705_v10 = vld [vmem:[#allocation18_spill] sm:$0xff] }
  0x8f   :  { %1829 = vmatmul.mubr.msk.f32.vlgmr.msra.gmra.mrb[8].mxu0 %vm647_vm7, %v1159_v62  ;;  %1845 = vmatmul.mubr.msk.f32.vlgmr.msra.gmra.mrb[8].mxu1 %vm647_vm7, %v1159_v62  ;;  %v1163_v38 = vsel %vm532_vm1, %v1162_v42, %v1161_v26  ;;  %v1172_v46 = vrot.slane %v421_v39, 1  ;;  %v422_v15 = vmax.f32 %v1948_v37, %v3695_v56  ;;  %v423_v32 = vmax.f32 %v3697_v49, %v3696_v23  ;;  %v3706_v5 = vld [vmem:[#allocation26_spill] sm:$0xff]  ;;  %v3707_v2 = vld [vmem:[#allocation21_spill] sm:$0xff]  ;;  %v3708_v13 = vld [vmem:[#allocation27_spill] sm:$0xff] }
  0x90   :  { %v1165_v24 = vsel %vm535_vm2, %v1164_v47, %v1163_v38  ;;  %v424_v14 = vmax.f32 %v3699_v18, %v3698_v33  ;;  %v425_v57 = vmax.f32 %v3701_v43, %v3700_v25  ;;  %v426_v34 = vmax.f32 %v3703_v58, %v3702_v28  ;;  %v3709_v31 = vld [vmem:[#allocation22_spill] sm:$0xff]  ;;  %v3716_v23 = vld [vmem:[#allocation39_spill] sm:$0xff]  ;;  %v3718_v33 = vld [vmem:[#allocation40_spill] sm:$0xff] }
  0x91   :  { %v1167_v51 = vsel %vm538_vm3, %v1166_v63, %v1165_v24  ;;  %v427_v30 = vmax.f32 %v3705_v10, %v3704_v11  ;;  %v428_v54 = vmax.f32 %v3707_v2, %v3706_v5  ;;  %v429_v40 = vmax.f32 %v3709_v31, %v3708_v13  ;;  %v3710_v47 = vld [vmem:[#allocation34_spill] sm:$0xff]  ;;  %v3711_v63 = vld [vmem:[#allocation28_spill] sm:$0xff]  ;;  %v3717_v49 = vld [vmem:[#allocation31_spill] sm:$0xff] }
  0x92   :  { %v1169_v12 = vsel %vm541_vm4, %v1168_v60, %v1167_v51  ;;  %v1174_v45 = vrot.slane %v423_v32, 7  ;;  %v1176_v41 = vrot.slane %v424_v14, 6  ;;  %v1178_v61 = vrot.slane %v425_v57, 5  ;;  %v3712_v60 = vld [vmem:[#allocation35_spill] sm:$0xff]  ;;  %v3715_v56 = vld [vmem:[#allocation30_spill] sm:$0xff]  ;;  %v3719_v18 = vld [vmem:[#allocation32_spill] sm:$0xff] }
  0x93   :  { %v1171_v36 = vsel %vm544_vm5, %v1170_v7, %v1169_v12  ;;  %v1180_v55 = vrot.slane %v426_v34, 4  ;;  %v1182_v39 = vrot.slane %v427_v30, 3  ;;  %v1184_v42 = vrot.slane %v428_v54, 2  ;;  %v3713_v7 = vld [vmem:[#allocation29_spill] sm:$0xff]  ;;  %v3722_v28 = vld [vmem:[#allocation42_spill] sm:$0xff]  ;;  %v3724_v11 = vld [vmem:[#allocation43_spill] sm:$0xff] }
  0x94   :  { %v1173_v50 = vsel %vm547_vm6, %v1172_v46, %v1171_v36  ;;  %v1175_v1 = vsel %vm529_vm0, %v1174_v45, %v422_v15  ;;  %v1186_v26 = vrot.slane %v429_v40, 1  ;;  %v430_v38 = vmax.f32 %v3711_v63, %v3710_v47  ;;  %v3714_v46 = vld [vmem:[#allocation36_spill] sm:$0xff]  ;;  %v3720_v25 = vld [vmem:[#allocation41_spill] sm:$0xff]  ;;  %v3725_v10 = vld [vmem:[#allocation38_spill] sm:$0xff] }
  0x95   :  { %1831 = vmatprep.mubr.msk.f32.mxu0 %vm647_vm7, %v1173_v50  ;;  %v1177_v62 = vsel %vm532_vm1, %v1176_v41, %v1175_v1  ;;  %1847 = vmatprep.mubr.msk.f32.mxu1 %vm647_vm7, %v1173_v50  ;;  %v431_v24 = vmax.f32 %v3713_v7, %v3712_v60  ;;  %v432_v15 = vmax.f32 %v3715_v56, %v3714_v46  ;;  %v3721_v43 = vld [vmem:[#allocation33_spill] sm:$0xff]  ;;  %v3730_v63 = vld [vmem:[#allocation52_spill] sm:$0xff]  ;;  %v3731_v60 = vld [vmem:[#allocation46_spill] sm:$0xff] }
  0x96   :  { %v1179_v37 = vsel %vm535_vm2, %v1178_v61, %v1177_v62  ;;  %v433_v32 = vmax.f32 %v3717_v49, %v3716_v23  ;;  %v434_v14 = vmax.f32 %v3719_v18, %v3718_v33  ;;  %v435_v57 = vmax.f32 %v3721_v43, %v3720_v25  ;;  %v3723_v58 = vld [vmem:[#allocation37_spill] sm:$0xff]  ;;  %v3726_v61 = vld [vmem:[#allocation47_spill] sm:$0xff]  ;;  %v3734_v46 = vld [vmem:[#allocation56_spill] sm:$0xff] }
  0x97   :  { %v1181_v51 = vsel %vm538_vm3, %v1180_v55, %v1179_v37  ;;  %v436_v34 = vmax.f32 %v3723_v58, %v3722_v28  ;;  %v437_v30 = vmax.f32 %v3725_v10, %v3724_v11  ;;  %v1188_v5 = vrot.slane %v431_v24, 7  ;;  %v3727_v55 = vld [vmem:[#allocation44_spill] sm:$0xff]  ;;  %v3728_v62 = vld [vmem:[#allocation51_spill] sm:$0xff]  ;;  %v3729_v47 = vld [vmem:[#allocation45_spill] sm:$0xff] }
  0x98   :  { %v1183_v12 = vsel %vm541_vm4, %v1182_v39, %v1181_v51  ;;  %v1190_v2 = vrot.slane %v432_v15, 6  ;;  %v1192_v54 = vrot.slane %v433_v32, 5  ;;  %v1194_v31 = vrot.slane %v434_v14, 4  ;;  %v3733_v24 = vld [vmem:[#allocation48_spill] sm:$0xff]  ;;  %v3735_v56 = vld [vmem:[#allocation49_spill] sm:$0xff]  ;;  %v3737_v49 = vld [vmem:[#allocation50_spill] sm:$0xff] }
  0x99   :  { %v1185_v13 = vsel %vm544_vm5, %v1184_v42, %v1183_v12  ;;  %v1196_v40 = vrot.slane %v435_v57, 3  ;;  %v1189_v36 = vsel %vm529_vm0, %v1188_v5, %v430_v38  ;;  %v1198_v41 = vrot.slane %v436_v34, 2  ;;  %v3732_v38 = vld [vmem:[#allocation55_spill] sm:$0xff]  ;;  %v3736_v23 = vld [vmem:[#allocation57_spill] sm:$0xff]  ;;  %v3738_v18 = vld [vmem:[#allocation58_spill] sm:$0xff] }
  0x9a   :  { %v1187_v45 = vsel %vm547_vm6, %v1186_v26, %v1185_v13  ;;  %v438_v50 = vmax.f32 %v3727_v55, %v3726_v61  ;;  %v1191_v1 = vsel %vm532_vm1, %v1190_v2, %v1189_v36  ;;  %v1200_v39 = vrot.slane %v437_v30, 1  ;;  %v3739_v14 = vld [vmem:[#allocation53_spill] sm:$0xff]  ;;  %v3740_v25 = vld [vmem:[#allocation59_spill] sm:$0xff]  ;;  %v3741_v43 = vld [vmem:[#allocation54_spill] sm:$0xff] }
  0x9b   :  { %1832 = vmatmul.mubr.msk.f32.gmra.mrb[10].mxu0 %vm647_vm7, %v1187_v45  ;;  %1848 = vmatmul.mubr.msk.f32.gmra.mrb[10].mxu1 %vm647_vm7, %v1187_v45  ;;  %v439_v42 = vmax.f32 %v3729_v47, %v3728_v62  ;;  %v440_v7 = vmax.f32 %v3731_v60, %v3730_v63  ;;  %v1193_v26 = vsel %vm535_vm2, %v1192_v54, %v1191_v1  ;;  %v3742_v55 = vld [vmem:[#allocation65_spill] sm:$0xff]  ;;  %v3746_v62 = vld [vmem:[#allocation67_spill] sm:$0xff]  ;;  %v3747_v47 = vld [vmem:[#allocation62_spill] sm:$0xff] }
  0x9c   :  { %v441_v37 = vmax.f32 %v3733_v24, %v3732_v38  ;;  %v442_v15 = vmax.f32 %v3735_v56, %v3734_v46  ;;  %v443_v32 = vmax.f32 %v3737_v49, %v3736_v23  ;;  %v1195_v33 = vsel %vm538_vm3, %v1194_v31, %v1193_v26  ;;  %v3748_v60 = vld [vmem:[#allocation68_spill] sm:$0xff] }
  0x9d   :  { %v444_v51 = vmax.f32 %v3739_v14, %v3738_v18  ;;  %v445_v57 = vmax.f32 %v3741_v43, %v3740_v25  ;;  %v1202_v28 = vrot.slane %v439_v42, 7  ;;  %v1197_v58 = vsel %vm541_vm4, %v1196_v40, %v1195_v33 }
  0x9e   :  { %v1204_v34 = vrot.slane %v440_v7, 6  ;;  %v1206_v11 = vrot.slane %v441_v37, 5  ;;  %v1208_v10 = vrot.slane %v442_v15, 4  ;;  %v1199_v30 = vsel %vm544_vm5, %v1198_v41, %v1197_v58  ;;  %v3749_v7 = vld [vmem:[#allocation63_spill] sm:$0xff] }
  0x9f   :  { %v1203_v12 = vsel %vm529_vm0, %v1202_v28, %v438_v50  ;;  %v1210_v5 = vrot.slane %v443_v32, 3  ;;  %v1201_v2 = vsel %vm547_vm6, %v1200_v39, %v1199_v30  ;;  %v1212_v13 = vrot.slane %v444_v51, 2  ;;  %v3743_v50 = vld [vmem:[#allocation60_spill] sm:$0xff]  ;;  %v3744_v39 = vld [vmem:[#allocation66_spill] sm:$0xff] }
  0xa0   :  { %v1205_v54 = vsel %vm532_vm1, %v1204_v34, %v1203_v12  ;;  %v446_v31 = vmax.f32 %v2815_v6, %v2846_v9  ;;  %1834 = vmatprep.mubr.msk.f32.mxu0 %vm647_vm7, %v1201_v2  ;;  %v1214_v45 = vrot.slane %v445_v57, 1  ;;  %1850 = vmatprep.mubr.msk.f32.mxu1 %vm647_vm7, %v1201_v2  ;;  %v447_v36 = vmax.f32 %v2820_v8, %v2851_v21  ;;  %v3745_v6 = vld [vmem:[#allocation61_spill] sm:$0xff]  ;;  %v3751_v21 = vld [vmem:[#allocation64_spill] sm:$0xff] }
  0xa1   :  { %v1207_v40 = vsel %vm535_vm2, %v1206_v11, %v1205_v54  ;;  %v448_v41 = vmax.f32 %v2825_v59, %v2856_v44  ;;  %v449_v1 = vmax.f32 %v3743_v50, %v3742_v55  ;;  %v450_v9 = vmax.f32 %v3745_v6, %v3744_v39  ;;  %v3750_v8 = vld [vmem:[#allocation69_spill] sm:$0xff] }
  0xa2   :  { %v1209_v61 = vsel %vm538_vm3, %v1208_v10, %v1207_v40  ;;  %v451_v42 = vmax.f32 %v3747_v47, %v3746_v62  ;;  %v452_v26 = vmax.f32 %v3749_v7, %v3748_v60  ;;  %v453_v38 = vmax.f32 %v3751_v21, %v3750_v8 }
  0xa3   :  { %v1211_v63 = vsel %vm541_vm4, %v1210_v5, %v1209_v61  ;;  %v1216_v59 = vrot.slane %v447_v36, 7  ;;  %v1218_v24 = vrot.slane %v448_v41, 6  ;;  %v1220_v37 = vrot.slane %v449_v1, 5 }
  0xa4   :  { %v1213_v44 = vsel %vm544_vm5, %v1212_v13, %v1211_v63  ;;  %v1222_v46 = vrot.slane %v450_v9, 4  ;;  %v1224_v23 = vrot.slane %v451_v42, 3  ;;  %v1226_v49 = vrot.slane %v452_v26, 2 }
  0xa5   :  { %v1215_v56 = vsel %vm547_vm6, %v1214_v45, %v1213_v44  ;;  %v1217_v15 = vsel %vm529_vm0, %v1216_v59, %v446_v31  ;;  %v1228_v33 = vrot.slane %v453_v38, 1  ;;  %v454_v18 = vmax.f32 %v2905_v0, %v2927_v3  ;;  %v3753_v3 = vld [vmem:[#allocation70_spill] sm:$0xff] }
  0xa6   :  { %1835 = vmatmul.mubr.msk.f32.gmra.mrb[12].mxu0 %vm647_vm7, %v1215_v56  ;;  %1851 = vmatmul.mubr.msk.f32.gmra.mrb[12].mxu1 %vm647_vm7, %v1215_v56  ;;  %v1219_v32 = vsel %vm532_vm1, %v1218_v24, %v1217_v15  ;;  %v455_v14 = vmax.f32 %v2917_v20, %v2952_v16  ;;  %v456_v25 = vmax.f32 %v2922_v48, %v2957_v22  ;;  %v3752_v20 = vld [vmem:[#allocation71_spill] sm:$0xff] }
  0xa7   :  { %v1221_v51 = vsel %vm535_vm2, %v1220_v37, %v1219_v32  ;;  %v457_v43 = vmax.f32 %v2937_v29, %v2973_v52  ;;  %v458_v57 = vmax.f32 %v2942_v19, %v2980_v17  ;;  %v459_v58 = vmax.f32 %v2947_v53, %v2985_v4 }
  0xa8   :  { %v1223_v28 = vsel %vm538_vm3, %v1222_v46, %v1221_v51  ;;  %v460_v0 = vmax.f32 %v2963_v35, %v2992_v27  ;;  %v461_v16 = vmax.f32 %v3753_v3, %v3752_v20  ;;  %v1230_v48 = vrot.slane %v455_v14, 7 }
  0xa9   :  { %v1225_v34 = vsel %vm541_vm4, %v1224_v23, %v1223_v28  ;;  %v1232_v22 = vrot.slane %v456_v25, 6  ;;  %v1234_v11 = vrot.slane %v457_v43, 5  ;;  %v1236_v29 = vrot.slane %v458_v57, 4 }
  0xaa   :  { %v1227_v52 = vsel %vm544_vm5, %v1226_v49, %v1225_v34  ;;  %v1231_v17 = vsel %vm529_vm0, %v1230_v48, %v454_v18  ;;  %v1238_v10 = vrot.slane %v459_v58, 3  ;;  %v1240_v4 = vrot.slane %v460_v0, 2 }
  0xab   :  { %v1229_v19 = vsel %vm547_vm6, %v1228_v33, %v1227_v52  ;;  %v1233_v35 = vsel %vm532_vm1, %v1232_v22, %v1231_v17  ;;  %v1242_v27 = vrot.slane %v461_v16, 1  ;;  %vm1697_vm0 = vcmask 64512  }
  0xac   :  { %1837 = vmatprep.mubr.msk.f32.mxu0 %vm647_vm7, %v1229_v19  ;;  %1853 = vmatprep.mubr.msk.f32.mxu1 %vm647_vm7, %v1229_v19  ;;  %v1235_v53 = vsel %vm535_vm2, %v1234_v11, %v1233_v35 }
  0xad   :  { %v1237_v30 = vsel %vm538_vm3, %v1236_v29, %v1235_v53 }
  0xae   :  { %v1239_v12 = vsel %vm541_vm4, %v1238_v10, %v1237_v30 }
  0xaf   :  { %v1241_v5 = vsel %vm544_vm5, %v1240_v4, %v1239_v12 }
  0xb0   :  { %v1243_v2 = vsel %vm547_vm6, %v1242_v27, %v1241_v5 }
  0xb1   :  { %1838 = vmatmul.mubr.msk.f32.gmra.mrb[14].mxu0 %vm647_vm7, %v1243_v2  ;;  %1854 = vmatmul.mubr.msk.f32.gmra.mrb[14].mxu1 %vm647_vm7, %v1243_v2 }
  0xeb   :  { %v1798_v54 = vpop.f32.mrb[0].mxu0 }
  0xec   :  { %v730_v13 = vpop.f32.mrb[1].mxu0  ;;  %v3377_v31 = vmul.f32 0.25, %v1798_v54 }
  0xed   :  { %v3379_v40 = vmul.f32 0.25, %v730_v13 }
  0xee   :  { %v1498_v45 = vmul.f32 %v3377_v31, %v3377_v31 }
  0xef   :  { %v1497_v36 = vmul.f32 %v3379_v40, %v3379_v40 }
  0xfc   :  { %v1814_v41 = vpop.f32.mrb[0].mxu1 }
  0xfd   :  { %v1490_v61 = vmul.f32 0.25, %v1814_v41  ;;  %v1027_v55 = vpop.f32.mrb[1].mxu1 }
  0xfe   :  { %v1489_v50 = vmul.f32 0.25, %v1027_v55 }
  0xff   :  { %v3385_v1 = vsub.f32 %v1490_v61, %v1498_v45 }
 0x100   :  { %v3387_v39 = vsub.f32 %v1489_v50, %v1497_v36 }
 0x107   :  { %v1801_v6 = vpop.f32.mrb[2].mxu0 }
 0x108   :  { %v740_v9 = vpop.f32.mrb[3].mxu0  ;;  %v3389_v62 = vmul.f32 0.25, %v1801_v6 }
 0x109   :  { %v3391_v47 = vmul.f32 0.25, %v740_v9 }
 0x10a   :  { %v1500_v42 = vmul.f32 %v3389_v62, %v3389_v62 }
 0x10b   :  { %v1499_v63 = vmul.f32 %v3391_v47, %v3391_v47 }
 0x11b   :  { %v1817_v60 = vpop.f32.mrb[2].mxu1 }
 0x11c   :  { %v1492_v7 = vmul.f32 0.25, %v1817_v60  ;;  %v1037_v26 = vpop.f32.mrb[3].mxu1 }
 0x11d   :  { %v1491_v8 = vmul.f32 0.25, %v1037_v26 }
 0x11e   :  { %v3397_v21 = vsub.f32 %v1492_v7, %v1500_v42 }
 0x11f   :  { %v3399_v38 = vsub.f32 %v1491_v8, %v1499_v63 }
 0x126   :  { %v1804_v59 = vpop.f32.mrb[4].mxu0 }
 0x127   :  { %v750_v44 = vpop.f32.mrb[5].mxu0  ;;  %v3401_v24 = vmul.f32 0.25, %v1804_v59 }
 0x128   :  { %v3403_v37 = vmul.f32 0.25, %v750_v44 }
 0x129   :  { %v1502_v46 = vmul.f32 %v3401_v24, %v3401_v24 }
 0x12a   :  { %v1501_v56 = vmul.f32 %v3403_v37, %v3403_v37 }
 0x13a   :  { %v1820_v15 = vpop.f32.mrb[4].mxu1 }
 0x13b   :  { %v1494_v23 = vmul.f32 0.25, %v1820_v15  ;;  %v1047_v49 = vpop.f32.mrb[5].mxu1 }
 0x13c   :  { %v1493_v32 = vmul.f32 0.25, %v1047_v49 }
 0x13d   :  { %v3409_v33 = vsub.f32 %v1494_v23, %v1502_v46 }
 0x13e   :  { %v3411_v18 = vsub.f32 %v1493_v32, %v1501_v56 }
 0x145   :  { %v1807_v14 = vpop.f32.mrb[6].mxu0 }
 0x146   :  { %v760_v51 = vpop.f32.mrb[7].mxu0  ;;  %v3413_v25 = vmul.f32 0.25, %v1807_v14 }
 0x147   :  { %v3415_v43 = vmul.f32 0.25, %v760_v51 }
 0x148   :  { %v1504_v57 = vmul.f32 %v3413_v25, %v3413_v25 }
 0x149   :  { %v1503_v28 = vmul.f32 %v3415_v43, %v3415_v43 }
 0x158   :  { %v1823_v58 = vpop.f32.mrb[6].mxu1 }
 0x159   :  { %v1496_v0 = vmul.f32 0.25, %v1823_v58  ;;  %v1057_v20 = vpop.f32.mrb[7].mxu1 }
 0x15a   :  { %v1495_v3 = vmul.f32 0.25, %v1057_v20 }
 0x15b   :  { %v3421_v16 = vsub.f32 %v1496_v0, %v1504_v57 }
 0x15c   :  { %v3423_v34 = vsub.f32 %v1495_v3, %v1503_v28 }
 0x162   :  { %v1830_v48 = vpop.f32.mrb[8].mxu0  ;;  %v1846_v22 = vpop.f32.mrb[8].mxu1 }
 0x163   :  { %v1326_v11 = vpop.f32.mrb[9].mxu0  ;;  %v1474_v52 = vmax.f32 %v1830_v48, %v1846_v22  ;;  %v1434_v29 = vpop.f32.mrb[9].mxu1 }
 0x164   :  { %v3425_v19 = vmax.f32 %v1326_v11, %v1434_v29 }
 0x165   :  { %v1522_v17 = vmin.f32 %v1474_v52, 20.0  ;;  %vm1514_vm9 = vcmp.gt.f32.partialorder %v1474_v52, 20.0 }
 0x166   :  { %v1521_v10 = vmin.f32 %v3425_v19, 20.0  ;;  %vm1513_vm11 = vcmp.gt.f32.partialorder %v3425_v19, 20.0 }
 0x167   :  { %v1531_v35 = vmul.f32 1.442695, %v1522_v17 }
 0x168   :  { %v1529_v4 = vmul.f32 1.442695, %v1521_v10 }
 0x169   :  { %1872 = vpow2.f32 %v1531_v35 }
 0x16a   :  { %1874 = vpow2.f32 %v1529_v4 }
 0x16e   :  { %v1833_v53 = vpop.f32.mrb[10].mxu0  ;;  %v1849_v27 = vpop.f32.mrb[10].mxu1 }
 0x16f   :  { %v1336_v30 = vpop.f32.mrb[11].mxu0  ;;  %v3428_v12 = vmax.f32 %v1833_v53, %v1849_v27  ;;  %v1444_v5 = vpop.f32.mrb[11].mxu1 }
 0x170   :  { %v3430_v2 = vmax.f32 %v1336_v30, %v1444_v5 }
 0x171   :  { %v1524_v54 = vmin.f32 %v3428_v12, 20.0  ;;  %vm1516_vm13 = vcmp.gt.f32.partialorder %v3428_v12, 20.0 }
 0x172   :  { %v1523_v13 = vmin.f32 %v3430_v2, 20.0  ;;  %vm1515_vm15 = vcmp.gt.f32.partialorder %v3430_v2, 20.0 }
 0x173   :  { %v1873_v45 = vpop.eup %1872  ;;  %v1535_v36 = vmul.f32 1.442695, %v1524_v54 }
 0x174   :  { %v1875_v41 = vpop.eup %1874  ;;  %v1554_v61 = vadd.f32 1.0, %v1873_v45  ;;  %v1533_v55 = vmul.f32 1.442695, %v1523_v13  ;;  %v1557_v6 = vmul.f32 -0.5, %v1873_v45  ;;  %v1560_v56 = vand.u32 2147483647, %v1873_v45 }
 0x175   :  { %v1545_v50 = vadd.f32 1.0, %v1875_v41  ;;  %1876 = vpow2.f32 %v1535_v36  ;;  %v1548_v63 = vmul.f32 -0.5, %v1875_v41  ;;  %v1551_v32 = vand.u32 2147483647, %v1875_v41 }
 0x176   :  { %1878 = vlog2.f32 %v1554_v61  ;;  %v1558_v44 = vadd.f32 1.0, %v1557_v6  ;;  %vm1561_vm8 = vcmp.lt.f32.partialorder %v1560_v56, 0.0004427343 }
 0x177   :  { %1880 = vlog2.f32 %v1545_v50  ;;  %v1549_v15 = vadd.f32 1.0, %v1548_v63  ;;  %vm1552_vm10 = vcmp.lt.f32.partialorder %v1551_v32, 0.0004427343 }
 0x178   :  { %1882 = vpow2.f32 %v1533_v55  ;;  %v1559_v0 = vmul.f32 %v1873_v45, %v1558_v44 }
 0x179   :  { %v1836_v9 = vpop.f32.mrb[12].mxu0  ;;  %v1852_v42 = vpop.f32.mrb[12].mxu1  ;;  %v1550_v48 = vmul.f32 %v1875_v41, %v1549_v15 }
 0x17a   :  { %v1346_v60 = vpop.f32.mrb[13].mxu0  ;;  %v3434_v7 = vmax.f32 %v1836_v9, %v1852_v42  ;;  %v1454_v26 = vpop.f32.mrb[13].mxu1 }
 0x17b   :  { %v3436_v8 = vmax.f32 %v1346_v60, %v1454_v26 }
 0x17c   :  { %v1526_v59 = vmin.f32 %v3434_v7, 20.0  ;;  %vm1518_vm1 = vcmp.gt.f32.partialorder %v3434_v7, 20.0 }
 0x17d   :  { %v1525_v46 = vmin.f32 %v3436_v8, 20.0  ;;  %vm1517_vm2 = vcmp.gt.f32.partialorder %v3436_v8, 20.0 }
 0x17e   :  { %v1539_v23 = vmul.f32 1.442695, %v1526_v59 }
 0x17f   :  { %v1877_v49 = vpop.eup %1876  ;;  %v1537_v14 = vmul.f32 1.442695, %v1525_v46 }
 0x180   :  { %v1879_v51 = vpop.eup %1878  ;;  %v1572_v57 = vadd.f32 1.0, %v1877_v49  ;;  %1884 = vpow2.f32 %v1539_v23  ;;  %v1575_v4 = vmul.f32 -0.5, %v1877_v49  ;;  %v1578_v6 = vand.u32 2147483647, %v1877_v49 }
 0x181   :  { %v1881_v28 = vpop.eup %1880  ;;  %v1556_v58 = vmul.f32 0.6931472, %v1879_v51  ;;  %1886 = vpow2.f32 %v1537_v14 }
 0x182   :  { %v1883_v20 = vpop.eup %1882  ;;  %v1547_v3 = vmul.f32 0.6931472, %v1881_v28  ;;  %1888 = vlog2.f32 %v1572_v57  ;;  %vm1579_vm12 = vcmp.lt.f32.partialorder %v1578_v6, 0.0004427343 }
 0x183   :  { %v1562_v22 = vsel %vm1561_vm8, %v1559_v0, %v1556_v58  ;;  %v1563_v11 = vadd.f32 1.0, %v1883_v20  ;;  %v1566_v36 = vmul.f32 -0.5, %v1883_v20  ;;  %v1569_v56 = vand.u32 2147483647, %v1883_v20 }
 0x184   :  { %v1618_v29 = vsel %vm1514_vm9, %v1474_v52, %v1562_v22  ;;  %v1553_v17 = vsel %vm1552_vm10, %v1550_v48, %v1547_v3  ;;  %v1839_v53 = vpop.f32.mrb[14].mxu0  ;;  %v1855_v27 = vpop.f32.mrb[14].mxu1 }
 0x185   :  { %v1626_v10 = vsub.f32 %v1618_v29, %v3377_v31  ;;  %v1617_v35 = vsel %vm1513_vm11, %v3425_v19, %v1553_v17  ;;  %1890 = vlog2.f32 %v1563_v11  ;;  %v1356_v5 = vpop.f32.mrb[15].mxu0  ;;  %v3444_v54 = vmax.f32 %v1839_v53, %v1855_v27  ;;  %v1464_v13 = vpop.f32.mrb[15].mxu1 }
 0x186   :  { %v1625_v30 = vsub.f32 %v1617_v35, %v3379_v40  ;;  %v3446_v52 = vmax.f32 %v1356_v5, %v1464_v13  ;;  %v1576_v19 = vadd.f32 1.0, %v1575_v4  ;;  %v1567_v42 = vadd.f32 1.0, %v1566_v36 }
 0x187   :  { %v1634_v45 = vmul.f32 %v1626_v10, %v1626_v10  ;;  %v1528_v61 = vmin.f32 %v3444_v54, 20.0  ;;  %vm1570_vm14 = vcmp.lt.f32.partialorder %v1569_v56, 0.0004427343  ;;  %vm1520_vm10 = vcmp.gt.f32.partialorder %v3444_v54, 20.0 }
 0x188   :  { %v1633_v41 = vmul.f32 %v1625_v30, %v1625_v30  ;;  %v1527_v40 = vmin.f32 %v3446_v52, 20.0  ;;  %v1577_v46 = vmul.f32 %v1877_v49, %v1576_v19  ;;  %v1568_v14 = vmul.f32 %v1883_v20, %v1567_v42 }
 0x189   :  { %v1642_v31 = vadd.f32 %v1634_v45, %v3385_v1  ;;  %v1543_v60 = vmul.f32 1.442695, %v1528_v61 }
 0x18a   :  { %v1885_v55 = vpop.eup %1884  ;;  %v1641_v50 = vadd.f32 %v1633_v41, %v3387_v39  ;;  %v1541_v15 = vmul.f32 1.442695, %v1527_v40 }
 0x18b   :  { %v1887_v9 = vpop.eup %1886  ;;  %1892 = vrcp.f32 %v1642_v31  ;;  %v1590_v63 = vadd.f32 1.0, %v1885_v55  ;;  %v1593_v28 = vmul.f32 -0.5, %v1885_v55  ;;  %v1596_v22 = vand.u32 2147483647, %v1885_v55 }
 0x18c   :  { %v1889_v26 = vpop.eup %1888  ;;  %1894 = vrcp.f32 %v1641_v50  ;;  %v1581_v59 = vadd.f32 1.0, %v1887_v9  ;;  %v1584_v49 = vmul.f32 -0.5, %v1887_v9  ;;  %v1587_v11 = vand.u32 2147483647, %v1887_v9 }
 0x18d   :  { %v1574_v44 = vmul.f32 0.6931472, %v1889_v26  ;;  %1896 = vlog2.f32 %v1590_v63  ;;  %v1594_v29 = vadd.f32 1.0, %v1593_v28  ;;  %vm3463_vm3 = vcmp.lt.f32.partialorder %v1596_v22, 0.0004427343 }
 0x18e   :  { %1898 = vlog2.f32 %v1581_v59  ;;  %v1585_v10 = vadd.f32 1.0, %v1584_v49  ;;  %vm3467_vm4 = vcmp.lt.f32.partialorder %v1587_v11, 0.0004427343 }
 0x18f   :  { %v1891_v23 = vpop.eup %1890  ;;  %v1580_v32 = vsel %vm1579_vm12, %v1577_v46, %v1574_v44  ;;  %1900 = vpow2.f32 %v1543_v60  ;;  %v1595_v13 = vmul.f32 %v1885_v55, %v1594_v29  ;;  %vm1519_vm12 = vcmp.gt.f32.partialorder %v3446_v52, 20.0 }
 0x190   :  { %v1620_v51 = vsel %vm1516_vm13, %v3428_v12, %v1580_v32  ;;  %v1565_v57 = vmul.f32 0.6931472, %v1891_v23  ;;  %1902 = vpow2.f32 %v1541_v15 }
 0x191   :  { %v1628_v58 = vsub.f32 %v1620_v51, %v3389_v62 }
 0x192   :  { %v1571_v0 = vsel %vm1570_vm14, %v1568_v14, %v1565_v57 }
 0x193   :  { %v1636_v3 = vmul.f32 %v1628_v58, %v1628_v58  ;;  %v1619_v48 = vsel %vm1515_vm15, %v3430_v2, %v1571_v0 }
 0x194   :  { %v1627_v20 = vsub.f32 %v1619_v48, %v3391_v47 }
 0x195   :  { %v1893_v17 = vpop.eup %1892  ;;  %v1644_v12 = vadd.f32 %v1636_v3, %v3397_v21 }
 0x196   :  { %v1895_v35 = vpop.eup %1894  ;;  %v1658_v62 = vmul.f32 %v1893_v17, %v3385_v1  ;;  %v1635_v4 = vmul.f32 %v1627_v20, %v1627_v20 }
 0x197   :  { %v1897_v53 = vpop.eup %1896  ;;  %v1657_v2 = vmul.f32 %v1895_v35, %v3387_v39  ;;  %1904 = vrcp.f32 %v1644_v12  ;;  %v1586_v39 = vmul.f32 %v1887_v9, %v1585_v10 }
 0x198   :  { %v1899_v30 = vpop.eup %1898  ;;  %vm1666_vm5 = vcmp.ne.f32.partialorder %v1658_v62, %v1658_v62  ;;  %v1643_v1 = vadd.f32 %v1635_v4, %v3399_v38  ;;  %v1592_v5 = vmul.f32 0.6931472, %v1897_v53 }
 0x199   :  { %v1901_v45 = vpop.eup %1900  ;;  %v1674_v36 = vsel %vm1666_vm5, 0.0, %v1658_v62  ;;  %vm1665_vm6 = vcmp.ne.f32.partialorder %v1657_v2, %v1657_v2  ;;  %v1583_v41 = vmul.f32 0.6931472, %v1899_v30 }
 0x19a   :  { %v1903_v61 = vpop.eup %1902  ;;  %v1745_v31 = vclamps-f32 %v1674_v36, 3.4028235e+38  ;;  %v1673_v19 = vsel %vm1665_vm6, 0.0, %v1657_v2  ;;  %1906 = vrcp.f32 %v1643_v1  ;;  %v1598_v50 = vsel %vm3463_vm3, %v1595_v13, %v1592_v5 }
 0x19b   :  { %v1744_v6 = vclamps-f32 %v1673_v19, 3.4028235e+38  ;;  %v1622_v40 = vsel %vm1518_vm1, %v3434_v7, %v1598_v50  ;;  %v1589_v55 = vsel %vm3467_vm4, %v1586_v39, %v1583_v41  ;;  %v1608_v42 = vadd.f32 1.0, %v1901_v45 }
 0x19c   :  { %1699 = vst.msk [vmem:[%s3535_s3 + $0x8] sm:$0xff] %vm1697_vm0, %v1745_v31  ;;  %v1630_v9 = vsub.f32 %v1622_v40, %v3401_v24  ;;  %v1621_v63 = vsel %vm1517_vm2, %v3436_v8, %v1589_v55  ;;  %v1599_v60 = vadd.f32 1.0, %v1903_v61  ;;  %v1611_v46 = vmul.f32 -0.5, %v1901_v45 }
 0x19d   :  { %1698 = vst.msk [vmem:[%s3535_s3] sm:$0xff] %vm1697_vm0, %v1744_v6  ;;  %v1629_v7 = vsub.f32 %v1621_v63, %v3403_v37  ;;  %1908 = vlog2.f32 %v1608_v42  ;;  %v1602_v15 = vmul.f32 -0.5, %v1903_v61  ;;  %v1614_v51 = vand.u32 2147483647, %v1901_v45 }
 0x19e   :  { %v1638_v26 = vmul.f32 %v1630_v9, %v1630_v9  ;;  %1910 = vlog2.f32 %v1599_v60  ;;  %v1612_v32 = vadd.f32 1.0, %v1611_v46  ;;  %v1605_v49 = vand.u32 2147483647, %v1903_v61 }
 0x19f   :  { %v1637_v59 = vmul.f32 %v1629_v7, %v1629_v7  ;;  %v1603_v28 = vadd.f32 1.0, %v1602_v15  ;;  %vm1615_vm9 = vcmp.lt.f32.partialorder %v1614_v51, 0.0004427343 }
 0x1a0   :  { %v1646_v44 = vadd.f32 %v1638_v26, %v3409_v33  ;;  %v1613_v3 = vmul.f32 %v1901_v45, %v1612_v32  ;;  %vm1606_vm11 = vcmp.lt.f32.partialorder %v1605_v49, 0.0004427343 }
 0x1a1   :  { %v1905_v24 = vpop.eup %1904  ;;  %v1645_v56 = vadd.f32 %v1637_v59, %v3411_v18  ;;  %v1604_v20 = vmul.f32 %v1903_v61, %v1603_v28 }
 0x1a2   :  { %v1660_v8 = vmul.f32 %v1905_v24, %v3397_v21  ;;  %1912 = vrcp.f32 %v1646_v44 }
 0x1a3   :  { %1914 = vrcp.f32 %v1645_v56 }
 0x1a4   :  { %v1907_v23 = vpop.eup %1906  ;;  %vm1668_vm7 = vcmp.ne.f32.partialorder %v1660_v8, %v1660_v8 }
 0x1a5   :  { %v1676_v37 = vsel %vm1668_vm7, 0.0, %v1660_v8  ;;  %v1659_v14 = vmul.f32 %v1907_v23, %v3399_v38 }
 0x1a6   :  { %v1747_v57 = vclamps-f32 %v1676_v37, 3.4028235e+38 }
 0x1a7   :  { %v1909_v58 = vpop.eup %1908  ;;  %vm1667_vm8 = vcmp.ne.f32.partialorder %v1659_v14, %v1659_v14 }
 0x1a8   :  { %1701 = vst.msk [vmem:[%s3535_s3 + $0x18] sm:$0xff] %vm1697_vm0, %v1747_v57  ;;  %v1675_v21 = vsel %vm1667_vm8, 0.0, %v1659_v14  ;;  %v1610_v0 = vmul.f32 0.6931472, %v1909_v58  ;;  %v1911_v48 = vpop.eup %1910 }
 0x1a9   :  { %v1746_v22 = vclamps-f32 %v1675_v21, 3.4028235e+38  ;;  %v1601_v11 = vmul.f32 0.6931472, %v1911_v48 }
 0x1aa   :  { %v1616_v38 = vsel %vm1615_vm9, %v1613_v3, %v1610_v0 }
 0x1ab   :  { %1700 = vst.msk [vmem:[%s3535_s3 + $0x10] sm:$0xff] %vm1697_vm0, %v1746_v22  ;;  %v1624_v29 = vsel %vm1520_vm10, %v3444_v54, %v1616_v38  ;;  %v1607_v10 = vsel %vm1606_vm11, %v1604_v20, %v1601_v11 }
 0x1ac   :  { %v1913_v17 = vpop.eup %1912  ;;  %v1632_v12 = vsub.f32 %v1624_v29, %v3413_v25  ;;  %v1623_v4 = vsel %vm1519_vm12, %v3446_v52, %v1607_v10 }
 0x1ad   :  { %v1915_v35 = vpop.eup %1914  ;;  %v1662_v62 = vmul.f32 %v1913_v17, %v3409_v33  ;;  %v1631_v47 = vsub.f32 %v1623_v4, %v3415_v43 }
 0x1ae   :  { %v1661_v53 = vmul.f32 %v1915_v35, %v3411_v18  ;;  %v1640_v2 = vmul.f32 %v1632_v12, %v1632_v12 }
 0x1af   :  { %vm1670_vm13 = vcmp.ne.f32.partialorder %v1662_v62, %v1662_v62  ;;  %v1639_v30 = vmul.f32 %v1631_v47, %v1631_v47 }
 0x1b0   :  { %v1678_v27 = vsel %vm1670_vm13, 0.0, %v1662_v62  ;;  %vm1669_vm14 = vcmp.ne.f32.partialorder %v1661_v53, %v1661_v53  ;;  %v1648_v54 = vadd.f32 %v1640_v2, %v3421_v16 }
 0x1b1   :  { %v1749_v25 = vclamps-f32 %v1678_v27, 3.4028235e+38  ;;  %v1677_v1 = vsel %vm1669_vm14, 0.0, %v1661_v53  ;;  %v1647_v13 = vadd.f32 %v1639_v30, %v3423_v34 }
 0x1b2   :  { %v1748_v5 = vclamps-f32 %v1677_v1, 3.4028235e+38  ;;  %1916 = vrcp.f32 %v1648_v54 }
 0x1b3   :  { %1703 = vst.msk [vmem:[%s3535_s3 + $0x28] sm:$0xff] %vm1697_vm0, %v1749_v25  ;;  %1918 = vrcp.f32 %v1647_v13 }
 0x1b4   :  { %1702 = vst.msk [vmem:[%s3535_s3 + $0x20] sm:$0xff] %vm1697_vm0, %v1748_v5 }
 0x1bc   :  { %v1917_v33 = vpop.eup %1916 }
 0x1bd   :  { %v1664_v18 = vmul.f32 %v1917_v33, %v3421_v16  ;;  %v1919_v43 = vpop.eup %1918 }
 0x1be   :  { %v1663_v52 = vmul.f32 %v1919_v43, %v3423_v34 }
 0x1bf   :  { %vm1672_vm15 = vcmp.ne.f32.partialorder %v1664_v18, %v1664_v18 }
 0x1c0   :  { %v1680_v45 = vsel %vm1672_vm15, 0.0, %v1664_v18  ;;  %vm1671_vm1 = vcmp.ne.f32.partialorder %v1663_v52, %v1663_v52 }
 0x1c1   :  { %v1751_v36 = vclamps-f32 %v1680_v45, 3.4028235e+38  ;;  %v1679_v41 = vsel %vm1671_vm1, 0.0, %v1663_v52 }
 0x1c2   :  { %v1750_v39 = vclamps-f32 %v1679_v41, 3.4028235e+38 }
 0x1c3   :  { %1705 = vst.msk [vmem:[%s3535_s3 + $0x38] sm:$0xff] %vm1697_vm0, %v1751_v36 }
 0x1c4   :  { %1704 = vst.msk [vmem:[%s3535_s3 + $0x30] sm:$0xff] %vm1697_vm0, %v1750_v39 }

</bundles_post_ra>
